<compile_context>
chip_gen: v7x
topology: tpu7x:2x2x1
jax: 0.10.0
libtpu: 0.0.40
codegen_flags: <defaults>
</compile_context>

<pallas_src>
import math

import jax
import jax.numpy as jnp
from jax import lax
from jax.experimental import pallas as pl
from jax.experimental.pallas import tpu as pltpu

# ----------------------------- model dims (small) -----------------------------
VOCAB = 128      # vocabulary size
D     = 64       # hidden size
NH    = 2        # attention heads
DH    = D // NH  # head dim = 32
FF    = 128      # MLP intermediate size
LAYERS = 2
RMS_EPS = 1e-6

B, S = 2, 8      # batch, sequence for the example run


# ------------------------------ fused LM kernel --------------------------------
def _fused_lm_kernel(x_ref, mask_ref, cos_ref, sin_ref,
                     ln1_ref, wqkv_ref, bqkv_ref, wo_ref, bo_ref,
                     ln2_ref, wgu_ref, wd_ref, bd_ref,
                     lnf_ref, wlm_ref, blm_ref,
                     o_ref):
    """Whole-model forward for one batch element (grid axis = batch)."""
    x = x_ref[0].astype(jnp.float32)          # (S, D) residual stream, f32 in VMEM
    cos = cos_ref[...]                        # (S, D) per-head-tiled RoPE tables
    sin = sin_ref[...]

    # Additive attention bias (causal + key padding), built once per batch
    # from the (1, S) mask row -- no (B, S, S) bias tensor in HBM.
    mask_row = mask_ref[0]                                    # (1, S) int32
    row = lax.broadcasted_iota(jnp.int32, (S, S), 0)
    col = lax.broadcasted_iota(jnp.int32, (S, S), 1)
    allow = (col <= row) & (mask_row > 0)                     # (S, S) bool
    bias = jnp.where(allow, 0.0, -1e30).astype(jnp.float32)   # (S, S)

    def rmsnorm(v, w):                        # v (S, D) f32, w (1, D) f32
        var = jnp.mean(v * v, axis=-1, keepdims=True)
        return v * lax.rsqrt(var + RMS_EPS) * w

    def rope(v):                              # v (S, D): per-head rotate_half
        parts = []
        for h in range(NH):
            lo = h * DH
            x1 = v[:, lo:lo + DH // 2]
            x2 = v[:, lo + DH // 2:lo + DH]
            parts.append(-x2)
            parts.append(x1)
        rot = jnp.concatenate(parts, axis=-1)
        return v * cos + rot * sin

    scale = 1.0 / math.sqrt(DH)

    for l in range(LAYERS):
        # ---------------- attention block ----------------
        hn = rmsnorm(x, ln1_ref[l])                                    # (S, D)
        qkv = jnp.dot(hn.astype(jnp.bfloat16), wqkv_ref[l],
                      preferred_element_type=jnp.float32)              # (S, 3D)
        qkv = qkv + bqkv_ref[l]
        q = rope(qkv[:, 0:D]) * scale         # fold 1/sqrt(DH) into q
        k = rope(qkv[:, D:2 * D])
        v = qkv[:, 2 * D:3 * D]

        heads = []
        for h in range(NH):
            lo = h * DH
            qh = q[:, lo:lo + DH]
            kh = k[:, lo:lo + DH]
            vh = v[:, lo:lo + DH]
            s = jnp.dot(qh, kh.T, preferred_element_type=jnp.float32) + bias
            m = jnp.max(s, axis=-1, keepdims=True)
            p = jnp.exp(s - m)
            l_inv = pl.reciprocal(jnp.sum(p, axis=-1, keepdims=True), approx=True)
            heads.append(jnp.dot(p, vh, preferred_element_type=jnp.float32) * l_inv)
        attn = jnp.concatenate(heads, axis=-1)                         # (S, D)

        # output projection with fused residual add
        x = x + jnp.dot(attn.astype(jnp.bfloat16), wo_ref[l],
                        preferred_element_type=jnp.float32) + bo_ref[l]

        # ---------------- MLP block (fused SwiGLU) ----------------
        hn2 = rmsnorm(x, ln2_ref[l])
        gu = jnp.dot(hn2.astype(jnp.bfloat16), wgu_ref[l],
                     preferred_element_type=jnp.float32)               # (S, 2*FF)
        g = gu[:, :FF]
        u = gu[:, FF:]
        act = g * jax.nn.sigmoid(g) * u
        x = x + jnp.dot(act.astype(jnp.bfloat16), wd_ref[l],
                        preferred_element_type=jnp.float32) + bd_ref[l]

    # ---------------- final norm + LM head ----------------
    xf = rmsnorm(x, lnf_ref[...])
    logits = jnp.dot(xf.astype(jnp.bfloat16), wlm_ref[...],
                     preferred_element_type=jnp.float32) + blm_ref[...]
    o_ref[0] = logits.astype(o_ref.dtype)     # lane-dense (S, VOCAB=128) store


# ----------------------------------- glue --------------------------------------
def rope_tables(seq, dh):
    inv_freq = 1.0 / (10000.0 ** (jnp.arange(0, dh, 2, dtype=jnp.float32) / dh))
    t = jnp.arange(seq, dtype=jnp.float32)
    freqs = jnp.outer(t, inv_freq)                    # (S, dh/2)
    emb = jnp.concatenate([freqs, freqs], axis=-1)    # (S, dh)
    return jnp.cos(emb), jnp.sin(emb)


def init_params(key):
    """Deterministic synthetic weights (stand-in for the pretrained checkpoint).

    Matmul weights are bf16 (native MXU operand dtype, f32 accumulation);
    norm weights and biases stay f32.  QKV is fused into one (D, 3D) weight,
    gate|up into one (D, 2*FF) weight, and per-layer tensors are stacked with
    a leading LAYERS axis so the whole model fits a single pallas_call.
    """
    def nrm(k, shape, scale=0.02):
        return (scale * jax.random.normal(k, shape, dtype=jnp.float32)).astype(jnp.bfloat16)

    keys = iter(jax.random.split(key, 4 + LAYERS * 8))
    params = {
        "embed": 0.02 * jax.random.normal(next(keys), (VOCAB, D), dtype=jnp.float32),
        "lnf_w": jnp.ones((1, D), jnp.float32),
        "lm_head_w": nrm(next(keys), (D, VOCAB)),
        "lm_head_b": jnp.zeros((1, VOCAB), jnp.float32),
    }
    ln1, wqkv, bqkv, wo, bo, ln2, wgu, wd, bd = ([] for _ in range(9))
    for _ in range(LAYERS):
        ln1.append(jnp.ones((1, D), jnp.float32))
        wqkv.append(nrm(next(keys), (D, 3 * D)))
        bqkv.append(0.02 * jax.random.normal(next(keys), (1, 3 * D), dtype=jnp.float32))
        wo.append(nrm(next(keys), (D, D)))
        bo.append(jnp.zeros((1, D), jnp.float32))
        ln2.append(jnp.ones((1, D), jnp.float32))
        wgu.append(nrm(next(keys), (D, 2 * FF)))
        wd.append(nrm(next(keys), (FF, D)))
        bd.append(jnp.zeros((1, D), jnp.float32))
    params.update(
        ln1_w=jnp.stack(ln1), w_qkv=jnp.stack(wqkv), b_qkv=jnp.stack(bqkv),
        wo=jnp.stack(wo), bo=jnp.stack(bo), ln2_w=jnp.stack(ln2),
        w_gu=jnp.stack(wgu), wd=jnp.stack(wd), bd=jnp.stack(bd))
    return params


def reference_model_forward(params, input_ids, attention_mask):
    """Equivalent of ReferenceModel.forward: returns logits [B, S, VOCAB] f16."""
    Bc, Sc = input_ids.shape
    # TODO(synk): embedding lookup is a gather; kept in plain JAX (no clean
    # small-scale Pallas equivalent needed; everything else is in the kernel).
    x = jnp.take(params["embed"], input_ids, axis=0)                  # (B, S, D) f32

    cos, sin = rope_tables(Sc, DH)                                    # (S, DH)
    cos_f = jnp.tile(cos, (1, NH))                                    # (S, D)
    sin_f = jnp.tile(sin, (1, NH))
    mask3 = attention_mask.reshape(Bc, 1, Sc).astype(jnp.int32)       # (B, 1, S)

    full = lambda *shape: pl.BlockSpec(shape, lambda b: (0,) * len(shape))

    logits = pl.pallas_call(
        _fused_lm_kernel,
        out_shape=jax.ShapeDtypeStruct((Bc, Sc, VOCAB), jnp.bfloat16),
        grid_spec=pltpu.PrefetchScalarGridSpec(
            num_scalar_prefetch=0,
            grid=(Bc,),
            in_specs=[
                pl.BlockSpec((1, Sc, D), lambda b: (b, 0, 0)),        # embedded x
                pl.BlockSpec((1, 1, Sc), lambda b: (b, 0, 0)),        # attention mask
                full(Sc, D),                                          # cos
                full(Sc, D),                                          # sin
                full(LAYERS, 1, D),                                   # ln1_w
                full(LAYERS, D, 3 * D),                               # w_qkv (bf16)
                full(LAYERS, 1, 3 * D),                               # b_qkv
                full(LAYERS, D, D),                                   # wo (bf16)
                full(LAYERS, 1, D),                                   # bo
                full(LAYERS, 1, D),                                   # ln2_w
                full(LAYERS, D, 2 * FF),                              # w_gu (bf16)
                full(LAYERS, FF, D),                                  # wd (bf16)
                full(LAYERS, 1, D),                                   # bd
                full(1, D),                                           # lnf_w
                full(D, VOCAB),                                       # lm_head_w (bf16)
                full(1, VOCAB),                                       # lm_head_b
            ],
            out_specs=pl.BlockSpec((1, Sc, VOCAB), lambda b: (b, 0, 0)),
        ),
        compiler_params=pltpu.CompilerParams(
            dimension_semantics=("parallel",)),      # v7x: one batch per TensorCore
    )(x, mask3, cos_f, sin_f,
      params["ln1_w"], params["w_qkv"], params["b_qkv"],
      params["wo"], params["bo"], params["ln2_w"],
      params["w_gu"], params["wd"], params["bd"],
      params["lnf_w"], params["lm_head_w"], params["lm_head_b"])

    # Reference model is loaded with torch_dtype=float16 -> fp16 logits.
    # Kernel writes bf16 (narrow HBM writeback); cheap convert to f16 here.
    return logits.astype(jnp.float16)


if __name__ == "__main__":
    key = jax.random.PRNGKey(0)
    k_param, k_ids = jax.random.split(key)

    params = init_params(k_param)
    input_ids = jax.random.randint(k_ids, (B, S), 0, VOCAB, dtype=jnp.int32)
    # second sequence has 2 padding positions at the end
    attention_mask = jnp.array(
        [[1, 1, 1, 1, 1, 1, 1, 1],
         [1, 1, 1, 1, 1, 1, 0, 0]], dtype=jnp.int32)

    fwd = jax.jit(reference_model_forward)
    logits = fwd(params, input_ids, attention_mask)
    jax.block_until_ready(logits)

    assert logits.shape == (B, S, VOCAB)
    assert logits.dtype == jnp.float16
    print("KERNEL_OK")
</pallas_src>

<mosaic_0001>
module attributes {stable_mosaic.version = 11 : i64} {
  func.func @_fused_lm_kernel(%arg0: i32, %arg1: memref<1x8x64xf32, #tpu.memory_space<vmem>>, %arg2: memref<1x1x8xi32, #tpu.memory_space<vmem>>, %arg3: memref<8x64xf32, #tpu.memory_space<vmem>>, %arg4: memref<8x64xf32, #tpu.memory_space<vmem>>, %arg5: memref<2x1x64xf32, #tpu.memory_space<vmem>>, %arg6: memref<2x64x192xbf16, #tpu.memory_space<vmem>>, %arg7: memref<2x1x192xf32, #tpu.memory_space<vmem>>, %arg8: memref<2x64x64xbf16, #tpu.memory_space<vmem>>, %arg9: memref<2x1x64xf32, #tpu.memory_space<vmem>>, %arg10: memref<2x1x64xf32, #tpu.memory_space<vmem>>, %arg11: memref<2x64x256xbf16, #tpu.memory_space<vmem>>, %arg12: memref<2x128x64xbf16, #tpu.memory_space<vmem>>, %arg13: memref<2x1x64xf32, #tpu.memory_space<vmem>>, %arg14: memref<1x64xf32, #tpu.memory_space<vmem>>, %arg15: memref<64x128xbf16, #tpu.memory_space<vmem>>, %arg16: memref<1x128xf32, #tpu.memory_space<vmem>>, %arg17: memref<1x8x128xbf16, #tpu.memory_space<vmem>>) attributes {dimension_semantics = [#tpu.dimension_semantics<parallel>], iteration_bounds = array<i64: 2>, scalar_prefetch = 0 : i64, scratch_operands = 0 : i64, tpu.core_type = #tpu.core_type<tc>, window_params = [{transform_indices = @transform_0, window_bounds = array<i64: 1, 8, 64>}, {transform_indices = @transform_1, window_bounds = array<i64: 1, 1, 8>}, {pipeline_mode = #tpu.pipeline_mode<synchronous>, transform_indices = @transform_2, window_bounds = array<i64: 8, 64>}, {pipeline_mode = #tpu.pipeline_mode<synchronous>, transform_indices = @transform_3, window_bounds = array<i64: 8, 64>}, {pipeline_mode = #tpu.pipeline_mode<synchronous>, transform_indices = @transform_4, window_bounds = array<i64: 2, 1, 64>}, {pipeline_mode = #tpu.pipeline_mode<synchronous>, transform_indices = @transform_5, window_bounds = array<i64: 2, 64, 192>}, {pipeline_mode = #tpu.pipeline_mode<synchronous>, transform_indices = @transform_6, window_bounds = array<i64: 2, 1, 192>}, {pipeline_mode = #tpu.pipeline_mode<synchronous>, transform_indices = @transform_7, window_bounds = array<i64: 2, 64, 64>}, {pipeline_mode = #tpu.pipeline_mode<synchronous>, transform_indices = @transform_8, window_bounds = array<i64: 2, 1, 64>}, {pipeline_mode = #tpu.pipeline_mode<synchronous>, transform_indices = @transform_9, window_bounds = array<i64: 2, 1, 64>}, {pipeline_mode = #tpu.pipeline_mode<synchronous>, transform_indices = @transform_10, window_bounds = array<i64: 2, 64, 256>}, {pipeline_mode = #tpu.pipeline_mode<synchronous>, transform_indices = @transform_11, window_bounds = array<i64: 2, 128, 64>}, {pipeline_mode = #tpu.pipeline_mode<synchronous>, transform_indices = @transform_12, window_bounds = array<i64: 2, 1, 64>}, {pipeline_mode = #tpu.pipeline_mode<synchronous>, transform_indices = @transform_13, window_bounds = array<i64: 1, 64>}, {pipeline_mode = #tpu.pipeline_mode<synchronous>, transform_indices = @transform_14, window_bounds = array<i64: 64, 128>}, {pipeline_mode = #tpu.pipeline_mode<synchronous>, transform_indices = @transform_15, window_bounds = array<i64: 1, 128>}, {transform_indices = @transform_16, window_bounds = array<i64: 1, 8, 128>}]} {
    %c0 = arith.constant 0 : index
    %c0_0 = arith.constant 0 : index
    %c0_1 = arith.constant 0 : index
    %0 = vector.load %arg1[%c0, %c0_0, %c0_1] : memref<1x8x64xf32, #tpu.memory_space<vmem>>, vector<1x8x64xf32>
    %1 = vector.shape_cast %0 : vector<1x8x64xf32> to vector<8x64xf32>
    %c0_2 = arith.constant 0 : index
    %c0_3 = arith.constant 0 : index
    %2 = vector.load %arg3[%c0_2, %c0_3] : memref<8x64xf32, #tpu.memory_space<vmem>>, vector<8x64xf32>
    %c0_4 = arith.constant 0 : index
    %c0_5 = arith.constant 0 : index
    %3 = vector.load %arg4[%c0_4, %c0_5] : memref<8x64xf32, #tpu.memory_space<vmem>>, vector<8x64xf32>
    %c0_6 = arith.constant 0 : index
    %c0_7 = arith.constant 0 : index
    %c0_8 = arith.constant 0 : index
    %4 = vector.load %arg2[%c0_6, %c0_7, %c0_8] : memref<1x1x8xi32, #tpu.memory_space<vmem>>, vector<1x1x8xi32>
    %5 = vector.shape_cast %4 : vector<1x1x8xi32> to vector<1x8xi32>
    %6 = tpu.iota {dimensions = array<i32: 0>} : vector<8x8xi32>
    %7 = tpu.iota {dimensions = array<i32: 1>} : vector<8x8xi32>
    %8 = arith.cmpi sle, %7, %6 : vector<8x8xi32>
    %c0_i32 = arith.constant 0 : i32
    %9 = vector.broadcast %c0_i32 : i32 to vector<1x8xi32>
    %10 = arith.cmpi sgt, %5, %9 : vector<1x8xi32>
    %11 = vector.broadcast %10 : vector<1x8xi1> to vector<8x8xi1>
    %12 = arith.andi %8, %11 : vector<8x8xi1>
    %cst = arith.constant 0.000000e+00 : f32
    %cst_9 = arith.constant -1.000000e+30 : f32
    %13 = vector.broadcast %cst : f32 to vector<8x8xf32>
    %14 = vector.broadcast %cst_9 : f32 to vector<8x8xf32>
    %15 = arith.select %12, %13, %14 : vector<8x8xi1>, vector<8x8xf32>
    %c0_10 = arith.constant 0 : index
    %c0_11 = arith.constant 0 : index
    %c0_12 = arith.constant 0 : index
    %16 = vector.load %arg5[%c0_10, %c0_11, %c0_12] : memref<2x1x64xf32, #tpu.memory_space<vmem>>, vector<1x1x64xf32>
    %17 = vector.shape_cast %16 : vector<1x1x64xf32> to vector<1x64xf32>
    %18 = arith.mulf %1, %1 : vector<8x64xf32>
    %cst_13 = arith.constant dense<0.000000e+00> : vector<8xf32>
    %19 = vector.multi_reduction <add>, %18, %cst_13 [1] : vector<8x64xf32> to vector<8xf32>
    %20 = vector.shape_cast %19 : vector<8xf32> to vector<8x1xf32>
    %cst_14 = arith.constant 6.400000e+01 : f32
    %21 = vector.broadcast %cst_14 : f32 to vector<8x1xf32>
    %22 = arith.divf %20, %21 : vector<8x1xf32>
    %cst_15 = arith.constant 9.99999997E-7 : f32
    %23 = vector.broadcast %cst_15 : f32 to vector<8x1xf32>
    %24 = arith.addf %22, %23 : vector<8x1xf32>
    %25 = math.rsqrt %24 : vector<8x1xf32>
    %26 = vector.broadcast %25 : vector<8x1xf32> to vector<8x64xf32>
    %27 = arith.mulf %1, %26 : vector<8x64xf32>
    %28 = vector.broadcast %17 : vector<1x64xf32> to vector<8x64xf32>
    %29 = arith.mulf %27, %28 : vector<8x64xf32>
    %30 = arith.truncf %29 : vector<8x64xf32> to vector<8x64xbf16>
    %c0_16 = arith.constant 0 : index
    %c0_17 = arith.constant 0 : index
    %c0_18 = arith.constant 0 : index
    %31 = vector.load %arg6[%c0_16, %c0_17, %c0_18] : memref<2x64x192xbf16, #tpu.memory_space<vmem>>, vector<1x64x192xbf16>
    %32 = vector.shape_cast %31 : vector<1x64x192xbf16> to vector<64x192xbf16>
    %cst_19 = arith.constant dense<0.000000e+00> : vector<8x192xf32>
    %33 = tpu.matmul %30, %32, %cst_19 {dimension_numbers = #tpu.dot_dimension_numbers<[1], [0], [0], [1], [0, 0, 1, 1], [], []>} : vector<8x64xbf16>, vector<64x192xbf16>, vector<8x192xf32> -> vector<8x192xf32>
    %c0_20 = arith.constant 0 : index
    %c0_21 = arith.constant 0 : index
    %c0_22 = arith.constant 0 : index
    %34 = vector.load %arg7[%c0_20, %c0_21, %c0_22] : memref<2x1x192xf32, #tpu.memory_space<vmem>>, vector<1x1x192xf32>
    %35 = vector.shape_cast %34 : vector<1x1x192xf32> to vector<1x192xf32>
    %36 = vector.broadcast %35 : vector<1x192xf32> to vector<8x192xf32>
    %37 = arith.addf %33, %36 : vector<8x192xf32>
    %38 = vector.extract_strided_slice %37 {offsets = [0, 0], sizes = [8, 64], strides = [1, 1]} : vector<8x192xf32> to vector<8x64xf32>
    %39 = vector.extract_strided_slice %38 {offsets = [0, 0], sizes = [8, 16], strides = [1, 1]} : vector<8x64xf32> to vector<8x16xf32>
    %40 = vector.extract_strided_slice %38 {offsets = [0, 16], sizes = [8, 16], strides = [1, 1]} : vector<8x64xf32> to vector<8x16xf32>
    %cst_23 = arith.constant 0.000000e+00 : f32
    %41 = vector.broadcast %cst_23 : f32 to vector<8x16xf32>
    %42 = arith.subf %41, %40 : vector<8x16xf32>
    %43 = vector.extract_strided_slice %38 {offsets = [0, 32], sizes = [8, 16], strides = [1, 1]} : vector<8x64xf32> to vector<8x16xf32>
    %44 = vector.extract_strided_slice %38 {offsets = [0, 48], sizes = [8, 16], strides = [1, 1]} : vector<8x64xf32> to vector<8x16xf32>
    %cst_24 = arith.constant 0.000000e+00 : f32
    %45 = vector.broadcast %cst_24 : f32 to vector<8x16xf32>
    %46 = arith.subf %45, %44 : vector<8x16xf32>
    %47 = tpu.concatenate %42, %39, %46, %43 in 1 : vector<8x16xf32>, vector<8x16xf32>, vector<8x16xf32>, vector<8x16xf32> -> vector<8x64xf32>
    %48 = arith.mulf %38, %2 : vector<8x64xf32>
    %49 = arith.mulf %47, %3 : vector<8x64xf32>
    %50 = arith.addf %48, %49 : vector<8x64xf32>
    %cst_25 = arith.constant 0.176776692 : f32
    %51 = vector.broadcast %cst_25 : f32 to vector<8x64xf32>
    %52 = arith.mulf %50, %51 : vector<8x64xf32>
    %53 = vector.extract_strided_slice %37 {offsets = [0, 64], sizes = [8, 64], strides = [1, 1]} : vector<8x192xf32> to vector<8x64xf32>
    %54 = vector.extract_strided_slice %53 {offsets = [0, 0], sizes = [8, 16], strides = [1, 1]} : vector<8x64xf32> to vector<8x16xf32>
    %55 = vector.extract_strided_slice %53 {offsets = [0, 16], sizes = [8, 16], strides = [1, 1]} : vector<8x64xf32> to vector<8x16xf32>
    %cst_26 = arith.constant 0.000000e+00 : f32
    %56 = vector.broadcast %cst_26 : f32 to vector<8x16xf32>
    %57 = arith.subf %56, %55 : vector<8x16xf32>
    %58 = vector.extract_strided_slice %53 {offsets = [0, 32], sizes = [8, 16], strides = [1, 1]} : vector<8x64xf32> to vector<8x16xf32>
    %59 = vector.extract_strided_slice %53 {offsets = [0, 48], sizes = [8, 16], strides = [1, 1]} : vector<8x64xf32> to vector<8x16xf32>
    %cst_27 = arith.constant 0.000000e+00 : f32
    %60 = vector.broadcast %cst_27 : f32 to vector<8x16xf32>
    %61 = arith.subf %60, %59 : vector<8x16xf32>
    %62 = tpu.concatenate %57, %54, %61, %58 in 1 : vector<8x16xf32>, vector<8x16xf32>, vector<8x16xf32>, vector<8x16xf32> -> vector<8x64xf32>
    %63 = arith.mulf %53, %2 : vector<8x64xf32>
    %64 = arith.mulf %62, %3 : vector<8x64xf32>
    %65 = arith.addf %63, %64 : vector<8x64xf32>
    %66 = vector.extract_strided_slice %37 {offsets = [0, 128], sizes = [8, 64], strides = [1, 1]} : vector<8x192xf32> to vector<8x64xf32>
    %67 = vector.extract_strided_slice %52 {offsets = [0, 0], sizes = [8, 32], strides = [1, 1]} : vector<8x64xf32> to vector<8x32xf32>
    %68 = vector.extract_strided_slice %65 {offsets = [0, 0], sizes = [8, 32], strides = [1, 1]} : vector<8x64xf32> to vector<8x32xf32>
    %69 = vector.extract_strided_slice %66 {offsets = [0, 0], sizes = [8, 32], strides = [1, 1]} : vector<8x64xf32> to vector<8x32xf32>
    %70 = tpu.transpose %68, [1, 0] : vector<8x32xf32> -> vector<32x8xf32>
    %cst_28 = arith.constant dense<0.000000e+00> : vector<8x8xf32>
    %71 = tpu.matmul %67, %70, %cst_28 {dimension_numbers = #tpu.dot_dimension_numbers<[1], [0], [0], [1], [0, 0, 1, 1], [], []>} : vector<8x32xf32>, vector<32x8xf32>, vector<8x8xf32> -> vector<8x8xf32>
    %72 = arith.addf %71, %15 : vector<8x8xf32>
    %cst_29 = arith.constant dense<0xFF800000> : vector<8xf32>
    %73 = vector.multi_reduction <maximumf>, %72, %cst_29 [1] : vector<8x8xf32> to vector<8xf32>
    %74 = vector.shape_cast %73 : vector<8xf32> to vector<8x1xf32>
    %75 = vector.broadcast %74 : vector<8x1xf32> to vector<8x8xf32>
    %76 = arith.subf %72, %75 : vector<8x8xf32>
    %77 = math.exp %76 : vector<8x8xf32>
    %cst_30 = arith.constant dense<0.000000e+00> : vector<8xf32>
    %78 = vector.multi_reduction <add>, %77, %cst_30 [1] : vector<8x8xf32> to vector<8xf32>
    %79 = vector.shape_cast %78 : vector<8xf32> to vector<8x1xf32>
    %80 = tpu.reciprocal %79 {approx = true} : vector<8x1xf32> -> vector<8x1xf32>
    %cst_31 = arith.constant dense<0.000000e+00> : vector<8x32xf32>
    %81 = tpu.matmul %77, %69, %cst_31 {dimension_numbers = #tpu.dot_dimension_numbers<[1], [0], [0], [1], [0, 0, 1, 1], [], []>} : vector<8x8xf32>, vector<8x32xf32>, vector<8x32xf32> -> vector<8x32xf32>
    %82 = vector.broadcast %80 : vector<8x1xf32> to vector<8x32xf32>
    %83 = arith.mulf %81, %82 : vector<8x32xf32>
    %84 = vector.extract_strided_slice %52 {offsets = [0, 32], sizes = [8, 32], strides = [1, 1]} : vector<8x64xf32> to vector<8x32xf32>
    %85 = vector.extract_strided_slice %65 {offsets = [0, 32], sizes = [8, 32], strides = [1, 1]} : vector<8x64xf32> to vector<8x32xf32>
    %86 = vector.extract_strided_slice %66 {offsets = [0, 32], sizes = [8, 32], strides = [1, 1]} : vector<8x64xf32> to vector<8x32xf32>
    %87 = tpu.transpose %85, [1, 0] : vector<8x32xf32> -> vector<32x8xf32>
    %cst_32 = arith.constant dense<0.000000e+00> : vector<8x8xf32>
    %88 = tpu.matmul %84, %87, %cst_32 {dimension_numbers = #tpu.dot_dimension_numbers<[1], [0], [0], [1], [0, 0, 1, 1], [], []>} : vector<8x32xf32>, vector<32x8xf32>, vector<8x8xf32> -> vector<8x8xf32>
    %89 = arith.addf %88, %15 : vector<8x8xf32>
    %cst_33 = arith.constant dense<0xFF800000> : vector<8xf32>
    %90 = vector.multi_reduction <maximumf>, %89, %cst_33 [1] : vector<8x8xf32> to vector<8xf32>
    %91 = vector.shape_cast %90 : vector<8xf32> to vector<8x1xf32>
    %92 = vector.broadcast %91 : vector<8x1xf32> to vector<8x8xf32>
    %93 = arith.subf %89, %92 : vector<8x8xf32>
    %94 = math.exp %93 : vector<8x8xf32>
    %cst_34 = arith.constant dense<0.000000e+00> : vector<8xf32>
    %95 = vector.multi_reduction <add>, %94, %cst_34 [1] : vector<8x8xf32> to vector<8xf32>
    %96 = vector.shape_cast %95 : vector<8xf32> to vector<8x1xf32>
    %97 = tpu.reciprocal %96 {approx = true} : vector<8x1xf32> -> vector<8x1xf32>
    %cst_35 = arith.constant dense<0.000000e+00> : vector<8x32xf32>
    %98 = tpu.matmul %94, %86, %cst_35 {dimension_numbers = #tpu.dot_dimension_numbers<[1], [0], [0], [1], [0, 0, 1, 1], [], []>} : vector<8x8xf32>, vector<8x32xf32>, vector<8x32xf32> -> vector<8x32xf32>
    %99 = vector.broadcast %97 : vector<8x1xf32> to vector<8x32xf32>
    %100 = arith.mulf %98, %99 : vector<8x32xf32>
    %101 = tpu.concatenate %83, %100 in 1 : vector<8x32xf32>, vector<8x32xf32> -> vector<8x64xf32>
    %102 = arith.truncf %101 : vector<8x64xf32> to vector<8x64xbf16>
    %c0_36 = arith.constant 0 : index
    %c0_37 = arith.constant 0 : index
    %c0_38 = arith.constant 0 : index
    %103 = vector.load %arg8[%c0_36, %c0_37, %c0_38] : memref<2x64x64xbf16, #tpu.memory_space<vmem>>, vector<1x64x64xbf16>
    %104 = vector.shape_cast %103 : vector<1x64x64xbf16> to vector<64x64xbf16>
    %cst_39 = arith.constant dense<0.000000e+00> : vector<8x64xf32>
    %105 = tpu.matmul %102, %104, %cst_39 {dimension_numbers = #tpu.dot_dimension_numbers<[1], [0], [0], [1], [0, 0, 1, 1], [], []>} : vector<8x64xbf16>, vector<64x64xbf16>, vector<8x64xf32> -> vector<8x64xf32>
    %106 = arith.addf %1, %105 : vector<8x64xf32>
    %c0_40 = arith.constant 0 : index
    %c0_41 = arith.constant 0 : index
    %c0_42 = arith.constant 0 : index
    %107 = vector.load %arg9[%c0_40, %c0_41, %c0_42] : memref<2x1x64xf32, #tpu.memory_space<vmem>>, vector<1x1x64xf32>
    %108 = vector.shape_cast %107 : vector<1x1x64xf32> to vector<1x64xf32>
    %109 = vector.broadcast %108 : vector<1x64xf32> to vector<8x64xf32>
    %110 = arith.addf %106, %109 : vector<8x64xf32>
    %c0_43 = arith.constant 0 : index
    %c0_44 = arith.constant 0 : index
    %c0_45 = arith.constant 0 : index
    %111 = vector.load %arg10[%c0_43, %c0_44, %c0_45] : memref<2x1x64xf32, #tpu.memory_space<vmem>>, vector<1x1x64xf32>
    %112 = vector.shape_cast %111 : vector<1x1x64xf32> to vector<1x64xf32>
    %113 = arith.mulf %110, %110 : vector<8x64xf32>
    %cst_46 = arith.constant dense<0.000000e+00> : vector<8xf32>
    %114 = vector.multi_reduction <add>, %113, %cst_46 [1] : vector<8x64xf32> to vector<8xf32>
    %115 = vector.shape_cast %114 : vector<8xf32> to vector<8x1xf32>
    %cst_47 = arith.constant 6.400000e+01 : f32
    %116 = vector.broadcast %cst_47 : f32 to vector<8x1xf32>
    %117 = arith.divf %115, %116 : vector<8x1xf32>
    %cst_48 = arith.constant 9.99999997E-7 : f32
    %118 = vector.broadcast %cst_48 : f32 to vector<8x1xf32>
    %119 = arith.addf %117, %118 : vector<8x1xf32>
    %120 = math.rsqrt %119 : vector<8x1xf32>
    %121 = vector.broadcast %120 : vector<8x1xf32> to vector<8x64xf32>
    %122 = arith.mulf %110, %121 : vector<8x64xf32>
    %123 = vector.broadcast %112 : vector<1x64xf32> to vector<8x64xf32>
    %124 = arith.mulf %122, %123 : vector<8x64xf32>
    %125 = arith.truncf %124 : vector<8x64xf32> to vector<8x64xbf16>
    %c0_49 = arith.constant 0 : index
    %c0_50 = arith.constant 0 : index
    %c0_51 = arith.constant 0 : index
    %126 = vector.load %arg11[%c0_49, %c0_50, %c0_51] : memref<2x64x256xbf16, #tpu.memory_space<vmem>>, vector<1x64x256xbf16>
    %127 = vector.shape_cast %126 : vector<1x64x256xbf16> to vector<64x256xbf16>
    %cst_52 = arith.constant dense<0.000000e+00> : vector<8x256xf32>
    %128 = tpu.matmul %125, %127, %cst_52 {dimension_numbers = #tpu.dot_dimension_numbers<[1], [0], [0], [1], [0, 0, 1, 1], [], []>} : vector<8x64xbf16>, vector<64x256xbf16>, vector<8x256xf32> -> vector<8x256xf32>
    %129 = vector.extract_strided_slice %128 {offsets = [0, 0], sizes = [8, 128], strides = [1, 1]} : vector<8x256xf32> to vector<8x128xf32>
    %130 = vector.extract_strided_slice %128 {offsets = [0, 128], sizes = [8, 128], strides = [1, 1]} : vector<8x256xf32> to vector<8x128xf32>
    %131 = arith.negf %129 : vector<8x128xf32>
    %132 = math.exp %131 : vector<8x128xf32>
    %cst_53 = arith.constant 1.000000e+00 : f32
    %133 = vector.broadcast %cst_53 : f32 to vector<8x128xf32>
    %134 = arith.addf %133, %132 : vector<8x128xf32>
    %135 = arith.divf %133, %134 : vector<8x128xf32>
    %136 = arith.mulf %129, %135 : vector<8x128xf32>
    %137 = arith.mulf %136, %130 : vector<8x128xf32>
    %138 = arith.truncf %137 : vector<8x128xf32> to vector<8x128xbf16>
    %c0_54 = arith.constant 0 : index
    %c0_55 = arith.constant 0 : index
    %c0_56 = arith.constant 0 : index
    %139 = vector.load %arg12[%c0_54, %c0_55, %c0_56] : memref<2x128x64xbf16, #tpu.memory_space<vmem>>, vector<1x128x64xbf16>
    %140 = vector.shape_cast %139 : vector<1x128x64xbf16> to vector<128x64xbf16>
    %cst_57 = arith.constant dense<0.000000e+00> : vector<8x64xf32>
    %141 = tpu.matmul %138, %140, %cst_57 {dimension_numbers = #tpu.dot_dimension_numbers<[1], [0], [0], [1], [0, 0, 1, 1], [], []>} : vector<8x128xbf16>, vector<128x64xbf16>, vector<8x64xf32> -> vector<8x64xf32>
    %142 = arith.addf %110, %141 : vector<8x64xf32>
    %c0_58 = arith.constant 0 : index
    %c0_59 = arith.constant 0 : index
    %c0_60 = arith.constant 0 : index
    %143 = vector.load %arg13[%c0_58, %c0_59, %c0_60] : memref<2x1x64xf32, #tpu.memory_space<vmem>>, vector<1x1x64xf32>
    %144 = vector.shape_cast %143 : vector<1x1x64xf32> to vector<1x64xf32>
    %145 = vector.broadcast %144 : vector<1x64xf32> to vector<8x64xf32>
    %146 = arith.addf %142, %145 : vector<8x64xf32>
    %c1 = arith.constant 1 : index
    %c0_61 = arith.constant 0 : index
    %c0_62 = arith.constant 0 : index
    %147 = vector.load %arg5[%c1, %c0_61, %c0_62] : memref<2x1x64xf32, #tpu.memory_space<vmem>>, vector<1x1x64xf32>
    %148 = vector.shape_cast %147 : vector<1x1x64xf32> to vector<1x64xf32>
    %149 = arith.mulf %146, %146 : vector<8x64xf32>
    %cst_63 = arith.constant dense<0.000000e+00> : vector<8xf32>
    %150 = vector.multi_reduction <add>, %149, %cst_63 [1] : vector<8x64xf32> to vector<8xf32>
    %151 = vector.shape_cast %150 : vector<8xf32> to vector<8x1xf32>
    %cst_64 = arith.constant 6.400000e+01 : f32
    %152 = vector.broadcast %cst_64 : f32 to vector<8x1xf32>
    %153 = arith.divf %151, %152 : vector<8x1xf32>
    %cst_65 = arith.constant 9.99999997E-7 : f32
    %154 = vector.broadcast %cst_65 : f32 to vector<8x1xf32>
    %155 = arith.addf %153, %154 : vector<8x1xf32>
    %156 = math.rsqrt %155 : vector<8x1xf32>
    %157 = vector.broadcast %156 : vector<8x1xf32> to vector<8x64xf32>
    %158 = arith.mulf %146, %157 : vector<8x64xf32>
    %159 = vector.broadcast %148 : vector<1x64xf32> to vector<8x64xf32>
    %160 = arith.mulf %158, %159 : vector<8x64xf32>
    %161 = arith.truncf %160 : vector<8x64xf32> to vector<8x64xbf16>
    %c1_66 = arith.constant 1 : index
    %c0_67 = arith.constant 0 : index
    %c0_68 = arith.constant 0 : index
    %162 = vector.load %arg6[%c1_66, %c0_67, %c0_68] : memref<2x64x192xbf16, #tpu.memory_space<vmem>>, vector<1x64x192xbf16>
    %163 = vector.shape_cast %162 : vector<1x64x192xbf16> to vector<64x192xbf16>
    %cst_69 = arith.constant dense<0.000000e+00> : vector<8x192xf32>
    %164 = tpu.matmul %161, %163, %cst_69 {dimension_numbers = #tpu.dot_dimension_numbers<[1], [0], [0], [1], [0, 0, 1, 1], [], []>} : vector<8x64xbf16>, vector<64x192xbf16>, vector<8x192xf32> -> vector<8x192xf32>
    %c1_70 = arith.constant 1 : index
    %c0_71 = arith.constant 0 : index
    %c0_72 = arith.constant 0 : index
    %165 = vector.load %arg7[%c1_70, %c0_71, %c0_72] : memref<2x1x192xf32, #tpu.memory_space<vmem>>, vector<1x1x192xf32>
    %166 = vector.shape_cast %165 : vector<1x1x192xf32> to vector<1x192xf32>
    %167 = vector.broadcast %166 : vector<1x192xf32> to vector<8x192xf32>
    %168 = arith.addf %164, %167 : vector<8x192xf32>
    %169 = vector.extract_strided_slice %168 {offsets = [0, 0], sizes = [8, 64], strides = [1, 1]} : vector<8x192xf32> to vector<8x64xf32>
    %170 = vector.extract_strided_slice %169 {offsets = [0, 0], sizes = [8, 16], strides = [1, 1]} : vector<8x64xf32> to vector<8x16xf32>
    %171 = vector.extract_strided_slice %169 {offsets = [0, 16], sizes = [8, 16], strides = [1, 1]} : vector<8x64xf32> to vector<8x16xf32>
    %cst_73 = arith.constant 0.000000e+00 : f32
    %172 = vector.broadcast %cst_73 : f32 to vector<8x16xf32>
    %173 = arith.subf %172, %171 : vector<8x16xf32>
    %174 = vector.extract_strided_slice %169 {offsets = [0, 32], sizes = [8, 16], strides = [1, 1]} : vector<8x64xf32> to vector<8x16xf32>
    %175 = vector.extract_strided_slice %169 {offsets = [0, 48], sizes = [8, 16], strides = [1, 1]} : vector<8x64xf32> to vector<8x16xf32>
    %cst_74 = arith.constant 0.000000e+00 : f32
    %176 = vector.broadcast %cst_74 : f32 to vector<8x16xf32>
    %177 = arith.subf %176, %175 : vector<8x16xf32>
    %178 = tpu.concatenate %173, %170, %177, %174 in 1 : vector<8x16xf32>, vector<8x16xf32>, vector<8x16xf32>, vector<8x16xf32> -> vector<8x64xf32>
    %179 = arith.mulf %169, %2 : vector<8x64xf32>
    %180 = arith.mulf %178, %3 : vector<8x64xf32>
    %181 = arith.addf %179, %180 : vector<8x64xf32>
    %cst_75 = arith.constant 0.176776692 : f32
    %182 = vector.broadcast %cst_75 : f32 to vector<8x64xf32>
    %183 = arith.mulf %181, %182 : vector<8x64xf32>
    %184 = vector.extract_strided_slice %168 {offsets = [0, 64], sizes = [8, 64], strides = [1, 1]} : vector<8x192xf32> to vector<8x64xf32>
    %185 = vector.extract_strided_slice %184 {offsets = [0, 0], sizes = [8, 16], strides = [1, 1]} : vector<8x64xf32> to vector<8x16xf32>
    %186 = vector.extract_strided_slice %184 {offsets = [0, 16], sizes = [8, 16], strides = [1, 1]} : vector<8x64xf32> to vector<8x16xf32>
    %cst_76 = arith.constant 0.000000e+00 : f32
    %187 = vector.broadcast %cst_76 : f32 to vector<8x16xf32>
    %188 = arith.subf %187, %186 : vector<8x16xf32>
    %189 = vector.extract_strided_slice %184 {offsets = [0, 32], sizes = [8, 16], strides = [1, 1]} : vector<8x64xf32> to vector<8x16xf32>
    %190 = vector.extract_strided_slice %184 {offsets = [0, 48], sizes = [8, 16], strides = [1, 1]} : vector<8x64xf32> to vector<8x16xf32>
    %cst_77 = arith.constant 0.000000e+00 : f32
    %191 = vector.broadcast %cst_77 : f32 to vector<8x16xf32>
    %192 = arith.subf %191, %190 : vector<8x16xf32>
    %193 = tpu.concatenate %188, %185, %192, %189 in 1 : vector<8x16xf32>, vector<8x16xf32>, vector<8x16xf32>, vector<8x16xf32> -> vector<8x64xf32>
    %194 = arith.mulf %184, %2 : vector<8x64xf32>
    %195 = arith.mulf %193, %3 : vector<8x64xf32>
    %196 = arith.addf %194, %195 : vector<8x64xf32>
    %197 = vector.extract_strided_slice %168 {offsets = [0, 128], sizes = [8, 64], strides = [1, 1]} : vector<8x192xf32> to vector<8x64xf32>
    %198 = vector.extract_strided_slice %183 {offsets = [0, 0], sizes = [8, 32], strides = [1, 1]} : vector<8x64xf32> to vector<8x32xf32>
    %199 = vector.extract_strided_slice %196 {offsets = [0, 0], sizes = [8, 32], strides = [1, 1]} : vector<8x64xf32> to vector<8x32xf32>
    %200 = vector.extract_strided_slice %197 {offsets = [0, 0], sizes = [8, 32], strides = [1, 1]} : vector<8x64xf32> to vector<8x32xf32>
    %201 = tpu.transpose %199, [1, 0] : vector<8x32xf32> -> vector<32x8xf32>
    %cst_78 = arith.constant dense<0.000000e+00> : vector<8x8xf32>
    %202 = tpu.matmul %198, %201, %cst_78 {dimension_numbers = #tpu.dot_dimension_numbers<[1], [0], [0], [1], [0, 0, 1, 1], [], []>} : vector<8x32xf32>, vector<32x8xf32>, vector<8x8xf32> -> vector<8x8xf32>
    %203 = arith.addf %202, %15 : vector<8x8xf32>
    %cst_79 = arith.constant dense<0xFF800000> : vector<8xf32>
    %204 = vector.multi_reduction <maximumf>, %203, %cst_79 [1] : vector<8x8xf32> to vector<8xf32>
    %205 = vector.shape_cast %204 : vector<8xf32> to vector<8x1xf32>
    %206 = vector.broadcast %205 : vector<8x1xf32> to vector<8x8xf32>
    %207 = arith.subf %203, %206 : vector<8x8xf32>
    %208 = math.exp %207 : vector<8x8xf32>
    %cst_80 = arith.constant dense<0.000000e+00> : vector<8xf32>
    %209 = vector.multi_reduction <add>, %208, %cst_80 [1] : vector<8x8xf32> to vector<8xf32>
    %210 = vector.shape_cast %209 : vector<8xf32> to vector<8x1xf32>
    %211 = tpu.reciprocal %210 {approx = true} : vector<8x1xf32> -> vector<8x1xf32>
    %cst_81 = arith.constant dense<0.000000e+00> : vector<8x32xf32>
    %212 = tpu.matmul %208, %200, %cst_81 {dimension_numbers = #tpu.dot_dimension_numbers<[1], [0], [0], [1], [0, 0, 1, 1], [], []>} : vector<8x8xf32>, vector<8x32xf32>, vector<8x32xf32> -> vector<8x32xf32>
    %213 = vector.broadcast %211 : vector<8x1xf32> to vector<8x32xf32>
    %214 = arith.mulf %212, %213 : vector<8x32xf32>
    %215 = vector.extract_strided_slice %183 {offsets = [0, 32], sizes = [8, 32], strides = [1, 1]} : vector<8x64xf32> to vector<8x32xf32>
    %216 = vector.extract_strided_slice %196 {offsets = [0, 32], sizes = [8, 32], strides = [1, 1]} : vector<8x64xf32> to vector<8x32xf32>
    %217 = vector.extract_strided_slice %197 {offsets = [0, 32], sizes = [8, 32], strides = [1, 1]} : vector<8x64xf32> to vector<8x32xf32>
    %218 = tpu.transpose %216, [1, 0] : vector<8x32xf32> -> vector<32x8xf32>
    %cst_82 = arith.constant dense<0.000000e+00> : vector<8x8xf32>
    %219 = tpu.matmul %215, %218, %cst_82 {dimension_numbers = #tpu.dot_dimension_numbers<[1], [0], [0], [1], [0, 0, 1, 1], [], []>} : vector<8x32xf32>, vector<32x8xf32>, vector<8x8xf32> -> vector<8x8xf32>
    %220 = arith.addf %219, %15 : vector<8x8xf32>
    %cst_83 = arith.constant dense<0xFF800000> : vector<8xf32>
    %221 = vector.multi_reduction <maximumf>, %220, %cst_83 [1] : vector<8x8xf32> to vector<8xf32>
    %222 = vector.shape_cast %221 : vector<8xf32> to vector<8x1xf32>
    %223 = vector.broadcast %222 : vector<8x1xf32> to vector<8x8xf32>
    %224 = arith.subf %220, %223 : vector<8x8xf32>
    %225 = math.exp %224 : vector<8x8xf32>
    %cst_84 = arith.constant dense<0.000000e+00> : vector<8xf32>
    %226 = vector.multi_reduction <add>, %225, %cst_84 [1] : vector<8x8xf32> to vector<8xf32>
    %227 = vector.shape_cast %226 : vector<8xf32> to vector<8x1xf32>
    %228 = tpu.reciprocal %227 {approx = true} : vector<8x1xf32> -> vector<8x1xf32>
    %cst_85 = arith.constant dense<0.000000e+00> : vector<8x32xf32>
    %229 = tpu.matmul %225, %217, %cst_85 {dimension_numbers = #tpu.dot_dimension_numbers<[1], [0], [0], [1], [0, 0, 1, 1], [], []>} : vector<8x8xf32>, vector<8x32xf32>, vector<8x32xf32> -> vector<8x32xf32>
    %230 = vector.broadcast %228 : vector<8x1xf32> to vector<8x32xf32>
    %231 = arith.mulf %229, %230 : vector<8x32xf32>
    %232 = tpu.concatenate %214, %231 in 1 : vector<8x32xf32>, vector<8x32xf32> -> vector<8x64xf32>
    %233 = arith.truncf %232 : vector<8x64xf32> to vector<8x64xbf16>
    %c1_86 = arith.constant 1 : index
    %c0_87 = arith.constant 0 : index
    %c0_88 = arith.constant 0 : index
    %234 = vector.load %arg8[%c1_86, %c0_87, %c0_88] : memref<2x64x64xbf16, #tpu.memory_space<vmem>>, vector<1x64x64xbf16>
    %235 = vector.shape_cast %234 : vector<1x64x64xbf16> to vector<64x64xbf16>
    %cst_89 = arith.constant dense<0.000000e+00> : vector<8x64xf32>
    %236 = tpu.matmul %233, %235, %cst_89 {dimension_numbers = #tpu.dot_dimension_numbers<[1], [0], [0], [1], [0, 0, 1, 1], [], []>} : vector<8x64xbf16>, vector<64x64xbf16>, vector<8x64xf32> -> vector<8x64xf32>
    %237 = arith.addf %146, %236 : vector<8x64xf32>
    %c1_90 = arith.constant 1 : index
    %c0_91 = arith.constant 0 : index
    %c0_92 = arith.constant 0 : index
    %238 = vector.load %arg9[%c1_90, %c0_91, %c0_92] : memref<2x1x64xf32, #tpu.memory_space<vmem>>, vector<1x1x64xf32>
    %239 = vector.shape_cast %238 : vector<1x1x64xf32> to vector<1x64xf32>
    %240 = vector.broadcast %239 : vector<1x64xf32> to vector<8x64xf32>
    %241 = arith.addf %237, %240 : vector<8x64xf32>
    %c1_93 = arith.constant 1 : index
    %c0_94 = arith.constant 0 : index
    %c0_95 = arith.constant 0 : index
    %242 = vector.load %arg10[%c1_93, %c0_94, %c0_95] : memref<2x1x64xf32, #tpu.memory_space<vmem>>, vector<1x1x64xf32>
    %243 = vector.shape_cast %242 : vector<1x1x64xf32> to vector<1x64xf32>
    %244 = arith.mulf %241, %241 : vector<8x64xf32>
    %cst_96 = arith.constant dense<0.000000e+00> : vector<8xf32>
    %245 = vector.multi_reduction <add>, %244, %cst_96 [1] : vector<8x64xf32> to vector<8xf32>
    %246 = vector.shape_cast %245 : vector<8xf32> to vector<8x1xf32>
    %cst_97 = arith.constant 6.400000e+01 : f32
    %247 = vector.broadcast %cst_97 : f32 to vector<8x1xf32>
    %248 = arith.divf %246, %247 : vector<8x1xf32>
    %cst_98 = arith.constant 9.99999997E-7 : f32
    %249 = vector.broadcast %cst_98 : f32 to vector<8x1xf32>
    %250 = arith.addf %248, %249 : vector<8x1xf32>
    %251 = math.rsqrt %250 : vector<8x1xf32>
    %252 = vector.broadcast %251 : vector<8x1xf32> to vector<8x64xf32>
    %253 = arith.mulf %241, %252 : vector<8x64xf32>
    %254 = vector.broadcast %243 : vector<1x64xf32> to vector<8x64xf32>
    %255 = arith.mulf %253, %254 : vector<8x64xf32>
    %256 = arith.truncf %255 : vector<8x64xf32> to vector<8x64xbf16>
    %c1_99 = arith.constant 1 : index
    %c0_100 = arith.constant 0 : index
    %c0_101 = arith.constant 0 : index
    %257 = vector.load %arg11[%c1_99, %c0_100, %c0_101] : memref<2x64x256xbf16, #tpu.memory_space<vmem>>, vector<1x64x256xbf16>
    %258 = vector.shape_cast %257 : vector<1x64x256xbf16> to vector<64x256xbf16>
    %cst_102 = arith.constant dense<0.000000e+00> : vector<8x256xf32>
    %259 = tpu.matmul %256, %258, %cst_102 {dimension_numbers = #tpu.dot_dimension_numbers<[1], [0], [0], [1], [0, 0, 1, 1], [], []>} : vector<8x64xbf16>, vector<64x256xbf16>, vector<8x256xf32> -> vector<8x256xf32>
    %260 = vector.extract_strided_slice %259 {offsets = [0, 0], sizes = [8, 128], strides = [1, 1]} : vector<8x256xf32> to vector<8x128xf32>
    %261 = vector.extract_strided_slice %259 {offsets = [0, 128], sizes = [8, 128], strides = [1, 1]} : vector<8x256xf32> to vector<8x128xf32>
    %262 = arith.negf %260 : vector<8x128xf32>
    %263 = math.exp %262 : vector<8x128xf32>
    %cst_103 = arith.constant 1.000000e+00 : f32
    %264 = vector.broadcast %cst_103 : f32 to vector<8x128xf32>
    %265 = arith.addf %264, %263 : vector<8x128xf32>
    %266 = arith.divf %264, %265 : vector<8x128xf32>
    %267 = arith.mulf %260, %266 : vector<8x128xf32>
    %268 = arith.mulf %267, %261 : vector<8x128xf32>
    %269 = arith.truncf %268 : vector<8x128xf32> to vector<8x128xbf16>
    %c1_104 = arith.constant 1 : index
    %c0_105 = arith.constant 0 : index
    %c0_106 = arith.constant 0 : index
    %270 = vector.load %arg12[%c1_104, %c0_105, %c0_106] : memref<2x128x64xbf16, #tpu.memory_space<vmem>>, vector<1x128x64xbf16>
    %271 = vector.shape_cast %270 : vector<1x128x64xbf16> to vector<128x64xbf16>
    %cst_107 = arith.constant dense<0.000000e+00> : vector<8x64xf32>
    %272 = tpu.matmul %269, %271, %cst_107 {dimension_numbers = #tpu.dot_dimension_numbers<[1], [0], [0], [1], [0, 0, 1, 1], [], []>} : vector<8x128xbf16>, vector<128x64xbf16>, vector<8x64xf32> -> vector<8x64xf32>
    %273 = arith.addf %241, %272 : vector<8x64xf32>
    %c1_108 = arith.constant 1 : index
    %c0_109 = arith.constant 0 : index
    %c0_110 = arith.constant 0 : index
    %274 = vector.load %arg13[%c1_108, %c0_109, %c0_110] : memref<2x1x64xf32, #tpu.memory_space<vmem>>, vector<1x1x64xf32>
    %275 = vector.shape_cast %274 : vector<1x1x64xf32> to vector<1x64xf32>
    %276 = vector.broadcast %275 : vector<1x64xf32> to vector<8x64xf32>
    %277 = arith.addf %273, %276 : vector<8x64xf32>
    %c0_111 = arith.constant 0 : index
    %c0_112 = arith.constant 0 : index
    %278 = vector.load %arg14[%c0_111, %c0_112] : memref<1x64xf32, #tpu.memory_space<vmem>>, vector<1x64xf32>
    %279 = arith.mulf %277, %277 : vector<8x64xf32>
    %cst_113 = arith.constant dense<0.000000e+00> : vector<8xf32>
    %280 = vector.multi_reduction <add>, %279, %cst_113 [1] : vector<8x64xf32> to vector<8xf32>
    %281 = vector.shape_cast %280 : vector<8xf32> to vector<8x1xf32>
    %cst_114 = arith.constant 6.400000e+01 : f32
    %282 = vector.broadcast %cst_114 : f32 to vector<8x1xf32>
    %283 = arith.divf %281, %282 : vector<8x1xf32>
    %cst_115 = arith.constant 9.99999997E-7 : f32
    %284 = vector.broadcast %cst_115 : f32 to vector<8x1xf32>
    %285 = arith.addf %283, %284 : vector<8x1xf32>
    %286 = math.rsqrt %285 : vector<8x1xf32>
    %287 = vector.broadcast %286 : vector<8x1xf32> to vector<8x64xf32>
    %288 = arith.mulf %277, %287 : vector<8x64xf32>
    %289 = vector.broadcast %278 : vector<1x64xf32> to vector<8x64xf32>
    %290 = arith.mulf %288, %289 : vector<8x64xf32>
    %291 = arith.truncf %290 : vector<8x64xf32> to vector<8x64xbf16>
    %c0_116 = arith.constant 0 : index
    %c0_117 = arith.constant 0 : index
    %292 = vector.load %arg15[%c0_116, %c0_117] : memref<64x128xbf16, #tpu.memory_space<vmem>>, vector<64x128xbf16>
    %cst_118 = arith.constant dense<0.000000e+00> : vector<8x128xf32>
    %293 = tpu.matmul %291, %292, %cst_118 {dimension_numbers = #tpu.dot_dimension_numbers<[1], [0], [0], [1], [0, 0, 1, 1], [], []>} : vector<8x64xbf16>, vector<64x128xbf16>, vector<8x128xf32> -> vector<8x128xf32>
    %c0_119 = arith.constant 0 : index
    %c0_120 = arith.constant 0 : index
    %294 = vector.load %arg16[%c0_119, %c0_120] : memref<1x128xf32, #tpu.memory_space<vmem>>, vector<1x128xf32>
    %295 = vector.broadcast %294 : vector<1x128xf32> to vector<8x128xf32>
    %296 = arith.addf %293, %295 : vector<8x128xf32>
    %297 = arith.truncf %296 : vector<8x128xf32> to vector<8x128xbf16>
    %c0_121 = arith.constant 0 : index
    %c0_122 = arith.constant 0 : index
    %c0_123 = arith.constant 0 : index
    %298 = vector.load %arg17[%c0_121, %c0_122, %c0_123] : memref<1x8x128xbf16, #tpu.memory_space<vmem>>, vector<1x8x128xbf16>
    %299 = vector.shape_cast %298 : vector<1x8x128xbf16> to vector<8x128xbf16>
    %300 = vector.shape_cast %297 : vector<8x128xbf16> to vector<1x8x128xbf16>
    tpu.vector_store %arg17[%c0_121, %c0_122, %c0_123], %300 {strides = array<i32>} : memref<1x8x128xbf16, #tpu.memory_space<vmem>>, vector<1x8x128xbf16>,
    return
  }
  func.func @transform_0(%arg0: i32) -> (i32, i32, i32) {
    %c0_i32 = arith.constant 0 : i32
    %c0_i32_0 = arith.constant 0 : i32
    %c0_i32_1 = arith.constant 0 : i32
    return %arg0, %c0_i32, %c0_i32_0 : i32, i32, i32
  }
  func.func @transform_1(%arg0: i32) -> (i32, i32, i32) {
    %c0_i32 = arith.constant 0 : i32
    %c0_i32_0 = arith.constant 0 : i32
    %c0_i32_1 = arith.constant 0 : i32
    return %arg0, %c0_i32, %c0_i32_0 : i32, i32, i32
  }
  func.func @transform_2(%arg0: i32) -> (i32, i32) {
    %c0_i32 = arith.constant 0 : i32
    %c0_i32_0 = arith.constant 0 : i32
    %c0_i32_1 = arith.constant 0 : i32
    return %c0_i32, %c0_i32_0 : i32, i32
  }
  func.func @transform_3(%arg0: i32) -> (i32, i32) {
    %c0_i32 = arith.constant 0 : i32
    %c0_i32_0 = arith.constant 0 : i32
    %c0_i32_1 = arith.constant 0 : i32
    return %c0_i32, %c0_i32_0 : i32, i32
  }
  func.func @transform_4(%arg0: i32) -> (i32, i32, i32) {
    %c0_i32 = arith.constant 0 : i32
    %c0_i32_0 = arith.constant 0 : i32
    %c0_i32_1 = arith.constant 0 : i32
    %c0_i32_2 = arith.constant 0 : i32
    return %c0_i32, %c0_i32_0, %c0_i32_1 : i32, i32, i32
  }
  func.func @transform_5(%arg0: i32) -> (i32, i32, i32) {
    %c0_i32 = arith.constant 0 : i32
    %c0_i32_0 = arith.constant 0 : i32
    %c0_i32_1 = arith.constant 0 : i32
    %c0_i32_2 = arith.constant 0 : i32
    return %c0_i32, %c0_i32_0, %c0_i32_1 : i32, i32, i32
  }
  func.func @transform_6(%arg0: i32) -> (i32, i32, i32) {
    %c0_i32 = arith.constant 0 : i32
    %c0_i32_0 = arith.constant 0 : i32
    %c0_i32_1 = arith.constant 0 : i32
    %c0_i32_2 = arith.constant 0 : i32
    return %c0_i32, %c0_i32_0, %c0_i32_1 : i32, i32, i32
  }
  func.func @transform_7(%arg0: i32) -> (i32, i32, i32) {
    %c0_i32 = arith.constant 0 : i32
    %c0_i32_0 = arith.constant 0 : i32
    %c0_i32_1 = arith.constant 0 : i32
    %c0_i32_2 = arith.constant 0 : i32
    return %c0_i32, %c0_i32_0, %c0_i32_1 : i32, i32, i32
  }
  func.func @transform_8(%arg0: i32) -> (i32, i32, i32) {
    %c0_i32 = arith.constant 0 : i32
    %c0_i32_0 = arith.constant 0 : i32
    %c0_i32_1 = arith.constant 0 : i32
    %c0_i32_2 = arith.constant 0 : i32
    return %c0_i32, %c0_i32_0, %c0_i32_1 : i32, i32, i32
  }
  func.func @transform_9(%arg0: i32) -> (i32, i32, i32) {
    %c0_i32 = arith.constant 0 : i32
    %c0_i32_0 = arith.constant 0 : i32
    %c0_i32_1 = arith.constant 0 : i32
    %c0_i32_2 = arith.constant 0 : i32
    return %c0_i32, %c0_i32_0, %c0_i32_1 : i32, i32, i32
  }
  func.func @transform_10(%arg0: i32) -> (i32, i32, i32) {
    %c0_i32 = arith.constant 0 : i32
    %c0_i32_0 = arith.constant 0 : i32
    %c0_i32_1 = arith.constant 0 : i32
    %c0_i32_2 = arith.constant 0 : i32
    return %c0_i32, %c0_i32_0, %c0_i32_1 : i32, i32, i32
  }
  func.func @transform_11(%arg0: i32) -> (i32, i32, i32) {
    %c0_i32 = arith.constant 0 : i32
    %c0_i32_0 = arith.constant 0 : i32
    %c0_i32_1 = arith.constant 0 : i32
    %c0_i32_2 = arith.constant 0 : i32
    return %c0_i32, %c0_i32_0, %c0_i32_1 : i32, i32, i32
  }
  func.func @transform_12(%arg0: i32) -> (i32, i32, i32) {
    %c0_i32 = arith.constant 0 : i32
    %c0_i32_0 = arith.constant 0 : i32
    %c0_i32_1 = arith.constant 0 : i32
    %c0_i32_2 = arith.constant 0 : i32
    return %c0_i32, %c0_i32_0, %c0_i32_1 : i32, i32, i32
  }
  func.func @transform_13(%arg0: i32) -> (i32, i32) {
    %c0_i32 = arith.constant 0 : i32
    %c0_i32_0 = arith.constant 0 : i32
    %c0_i32_1 = arith.constant 0 : i32
    return %c0_i32, %c0_i32_0 : i32, i32
  }
  func.func @transform_14(%arg0: i32) -> (i32, i32) {
    %c0_i32 = arith.constant 0 : i32
    %c0_i32_0 = arith.constant 0 : i32
    %c0_i32_1 = arith.constant 0 : i32
    return %c0_i32, %c0_i32_0 : i32, i32
  }
  func.func @transform_15(%arg0: i32) -> (i32, i32) {
    %c0_i32 = arith.constant 0 : i32
    %c0_i32_0 = arith.constant 0 : i32
    %c0_i32_1 = arith.constant 0 : i32
    return %c0_i32, %c0_i32_0 : i32, i32
  }
  func.func @transform_16(%arg0: i32) -> (i32, i32, i32) {
    %c0_i32 = arith.constant 0 : i32
    %c0_i32_0 = arith.constant 0 : i32
    %c0_i32_1 = arith.constant 0 : i32
    return %arg0, %c0_i32, %c0_i32_0 : i32, i32, i32
  }
}

</mosaic_0001>

<bundles_post_ra>
// kernel: tile.14
= control target key start
LH: loop header
LB: loop body
LE: loop exit
PB: predicated region body
PF: predicated region fallthrough
CT: control target
= control target key end

     0   :  { %vm42_vm0 = vcmask 1047556   ;;  %vm44_vm1 = vcmask 261120   ;;  %vm54_vm2 = vcmask 523520   ;;  %s111_s0 = inlined_call_operand.vmem [shape: f32[8,2,32], index: 0, kind: input, shape index: {}]   ;;  %s112_s1 = inlined_call_operand.vmem [shape: f32[8,64], index: 1, kind: output, shape index: {}]  }
   0x1   :  { %v62_v0 = vld [vmem:[%s111_s0 + $0xe] sm:$0x3]  ;;  %v63_v1 = vld [vmem:[%s111_s0 + $0xc] sm:$0x3]  ;;  %v64_v2 = vld [vmem:[%s111_s0 + $0xa] sm:$0x3] }
   0x2   :  { %8 = vst [vmem:[#allocation0 + $0x38] sm:$0x3] %v62_v0  ;;  %13 = vst [vmem:[#allocation0 + $0x30] sm:$0x3] %v63_v1  ;;  %v65_v3 = vld [vmem:[%s111_s0 + $0x8] sm:$0x3] }
   0x3   :  { %18 = vst [vmem:[#allocation0 + $0x28] sm:$0x3] %v64_v2  ;;  %v66_v4 = vld [vmem:[%s111_s0 + $0x6] sm:$0x3]  ;;  %v67_v5 = vld [vmem:[%s111_s0 + $0x4] sm:$0x3] }
   0x4   :  { %23 = vst [vmem:[#allocation0 + $0x20] sm:$0x3] %v65_v3  ;;  %28 = vst [vmem:[#allocation0 + $0x18] sm:$0x3] %v66_v4  ;;  %v68_v6 = vld [vmem:[%s111_s0 + $0x2] sm:$0x3] }
   0x5   :  { %33 = vst [vmem:[#allocation0 + $0x10] sm:$0x3] %v67_v5  ;;  %v38_v7 = vld [vmem:[%s111_s0] sm:$0x3]  ;;  %37 = vst [vmem:[#allocation0 + $0x8] sm:$0x3] %v68_v6 }
   0x6   :  { %39 = vst [vmem:[#allocation0] sm:$0x3] %v38_v7  ;;  %s70_s0 = smov 32  }
   0xb   :  { %v41_v8 = vld [vmem:[#allocation0] ss:$8 sm:$0xf0]   ;;  %v49_v9 = vld [vmem:[#allocation0 + $0x1] ss:$8 sm:$0xf0]  }
   0xd   :  { %v40_v10 = vld [vmem:[#allocation0] ss:$8 sm:$0xf]   ;;  %v47_v11 = vld [vmem:[#allocation0 + $0x1] ss:$8 sm:$0xf]  }
   0xe   :  { %v43_v12 = vsel %vm42_vm0, %v41_v8, %v40_v10  ;;  %v51_v13 = vsel %vm42_vm0, %v49_v9, %v47_v11 }
   0xf   :  { %52 = vrot.lane.b32.xlu0 %v51_v13, %s70_s0  ;;  %45 = vst.msk [vmem:[%s112_s1] sm:$0xff] %vm44_vm1, %v43_v12  }
  0x81   :  { %v53_v14 = vpop.permute.xlu0 %52  }
  0x82   :  { %55 = vst.msk [vmem:[%s112_s1] sm:$0xff] %vm54_vm2, %v53_v14  }

// kernel: reference_model_forward.1
= control target key start
LH: loop header
LB: loop body
LE: loop exit
PB: predicated region body
PF: predicated region fallthrough
CT: control target
= control target key end

     0   :  { %s2879_s21 = smov 0   ;;  %s3321_s0 = inlined_call_operand.vmem [shape: f32[2,8,64], index: 0, kind: input, shape index: {}]   ;;  %s3322_s1 = inlined_call_operand.vmem [shape: s32[2,1,8], index: 1, kind: input, shape index: {}]   ;;  %s3323_s2 = inlined_call_operand.vmem [shape: f32[8,64], index: 2, kind: input, shape index: {}]   ;;  %s3324_s3 = inlined_call_operand.vmem [shape: f32[8,64], index: 3, kind: input, shape index: {}]   ;;  %s3325_s4 = inlined_call_operand.vmem [shape: f32[2,1,64], index: 4, kind: input, shape index: {}]   ;;  %s3326_s5 = inlined_call_operand.vmem [shape: bf16[2,64,192], index: 5, kind: input, shape index: {}]   ;;  %s3327_s6 = inlined_call_operand.vmem [shape: f32[2,1,192], index: 6, kind: input, shape index: {}]   ;;  %s3328_s7 = inlined_call_operand.vmem [shape: bf16[2,64,64], index: 7, kind: input, shape index: {}]   ;;  %s3329_s8 = inlined_call_operand.vmem [shape: f32[2,1,64], index: 8, kind: input, shape index: {}]   ;;  %s3330_s9 = inlined_call_operand.vmem [shape: f32[2,1,64], index: 9, kind: input, shape index: {}]   ;;  %s3331_s10 = inlined_call_operand.vmem [shape: bf16[2,64,256], index: 10, kind: input, shape index: {}]   ;;  %s3332_s11 = inlined_call_operand.vmem [shape: bf16[2,128,64], index: 11, kind: input, shape index: {}]   ;;  %s3333_s12 = inlined_call_operand.vmem [shape: f32[2,1,64], index: 12, kind: input, shape index: {}]   ;;  %s3334_s13 = inlined_call_operand.vmem [shape: f32[1,64], index: 13, kind: input, shape index: {}]   ;;  %s3335_s14 = inlined_call_operand.vmem [shape: bf16[64,128], index: 14, kind: input, shape index: {}]   ;;  %s3336_s15 = inlined_call_operand.vmem [shape: f32[1,128], index: 15, kind: input, shape index: {}]   ;;  %s3337_s16 = inlined_call_operand.vmem [shape: bf16[2,8,128], index: 16, kind: output, shape index: {}]  }
   0x1   :  { %3344 = sst [smem:[#allocation2_spill]] %s3321_s0 }
   0x2 LB: > { %s2336_s22 = sadd.s32 4294967295, %s2781_s21   ;;  %p2340_p0 = scmp.ge.s32.totalorder %s2781_s21, 1  ;;  %s2781_s21 = sphi %s2879_s21, %s26_s21  }
   0x3   : > { %p469_p1 = scmp.lt.s32.totalorder %s2781_s21, 3 }
   0x5   : > { %p470_p2 = pnand %p2340_p0, %p469_p1 }
   0x6   : > { %p520_p3 = scmp.lt.s32.totalorder (!%p470_p2), %s2336_s22, 1  ;;  %s3345_s26 = sld [smem:[#allocation2_spill]] (!%p470_p2)  ;;  %vm552_vm0 = vcmask (!%p470_p2), 523264   ;;  %v2665_v3 = vld [vmem:[%s3326_s5 + $0x4] ss:$8 sps:$4 sm:$0xff] (!%p470_p2)   ;;  %v2783_v8 = vmov (!%p470_p2), 0   ;;  %v536_v20 = vlaneseq (!%p470_p2) }
   0x7   : > { %473 = sbr.rel (%p470_p2) target bundleno = 5719 (0x1657), region = 84  ;;  %v2667_v4 = vld [vmem:[%s3326_s5] ss:$8 sps:$4 sm:$0xff] (!%p470_p2)   ;;  %v2668_v5 = vld [vmem:[%s3326_s5 + $0x14] ss:$8 sps:$4 sm:$0xff] (!%p470_p2)   ;;  %632 = vmatprep.subr.bf16.mxu0 (!%p470_p2), %v2665_v3  ;;  %664 = vmatprep.mubr.bf16.mxu0 (!%p470_p2), %v2783_v8  ;;  %s2784_s20 = smov (!%p470_p2), 80  }
   0x8   : > { %633 = vmatpush1.bf16.msra.mxu0 (!%p470_p2), %v2667_v4  ;;  %v2670_v6 = vld [vmem:[%s3326_s5 + $0x10] ss:$8 sps:$4 sm:$0xff] (!%p470_p2)   ;;  %v2671_v7 = vld [vmem:[%s3326_s5 + $0x24] ss:$8 sps:$4 sm:$0xff] (!%p470_p2)   ;;  %v2673_v9 = vld [vmem:[%s3326_s5 + $0x20] ss:$8 sps:$4 sm:$0xff] (!%p470_p2)  }
   0x9   : > { %634 = vmatprep.subr.bf16.mxu0 (!%p470_p2), %v2668_v5  ;;  %v2674_v10 = vld [vmem:[%s3326_s5 + $0x34] ss:$8 sps:$4 sm:$0xff] (!%p470_p2)   ;;  %v2676_v11 = vld [vmem:[%s3326_s5 + $0x30] ss:$8 sps:$4 sm:$0xff] (!%p470_p2)   ;;  %v2343_v16 = vld [vmem:[%s3325_s4] ss:$0 sm:$0xff] (!%p470_p2) }
   0xa   : > { %v2929_v21 = vshrl.u32 (!%p470_p2), %v536_v20, 7  ;;  %v577_v23 = vld [vmem:[%s3327_s6] sm:$0x3] (!%p470_p2)  ;;  %vm682_vm1 = vcmask (!%p470_p2), 130048   ;;  %vm684_vm2 = vcmask (!%p470_p2), 261120   ;;  %vm686_vm3 = vcmask (!%p470_p2), 392192  }
   0xb   : > { %v2943_v31 = vld [vmem:[%s3323_s2] sm:$0xff] (!%p470_p2)  ;;  %s3343_s29 = smov (!%p470_p2), 112   ;;  %v2788_v39 = vmov (!%p470_p2), 0.0   ;;  %s3342_s30 = smov (!%p470_p2), 16   ;;  %vm2790_vm4 = vmmov (!%p470_p2), 0   ;;  %v539_v59 = vand.u32 (!%p470_p2), 127, %v536_v20 }
   0xc   : > { %635 = vmatpush1.bf16.msra.mxu0 (!%p470_p2), %v2670_v6  ;;  %v2932_v22 = vsub.s32 (!%p470_p2), 0, %v2929_v21  ;;  %v2951_v35 = vld [vmem:[%s3324_s3] sm:$0xff] (!%p470_p2)  ;;  %2530 = vmatprep.subr.mxu1 (!%p470_p2), %v2788_v39  ;;  %s3340_s0 = smov (!%p470_p2), 32   ;;  %s3338_s17 = smov (!%p470_p2), 96   ;;  %v585_v53 = vsub.s32 (!%p470_p2), 1, %v2929_v21  ;;  %vm790_vm9 = vcmask (!%p470_p2), 64512  }
   0xd   : > { %636 = vmatprep.subr.bf16.mxu0 (!%p470_p2), %v2671_v7  ;;  %2532 = vmatprep.mubr.msk.f32.mxu1 (!%p470_p2), %vm2790_vm4, %v2788_v39  ;;  %vm540_vm6 = vcmp.le.s32.totalorder (!%p470_p2), %v539_v59, %v2929_v21  ;;  %v2793_v61 = vmov (!%p470_p2), -1e+30   ;;  %v2687_v59 = vld [vmem:[%s3331_s10 + $0x20] ss:$8 sps:$4 sm:$0xff] (!%p470_p2)  }
   0xe   : > { %s3351_s22 = smov (!%p520_p3, %s2336_s22), 1  ;;  %v582_v24 = vrot.slane %v577_v23, %v2932_v22  ;;  %v586_v54 = vrot.slane %v577_v23, %v585_v53 }
   0xf   : > { %s2341_s23 = sshll.u32 %s3351_s22, 3  ;;  %s526_s24 = scalar_lea.vmem %s3322_s1, %s3351_s22 }
  0x10   : > { %s523_s27 = scalar_lea.vmem %s3345_s26, %s2341_s23  ;;  %637 = vmatpush1.bf16.msra.mxu0 %v2673_v9  ;;  %s2785_s23 = smov 48   ;;  %v535_v57 = vld [vmem:[%s526_s24] sm:$0x1] }
  0x11   : > { %v2893_v0 = vld [vmem:[%s523_s27] sm:$0xff]  ;;  %638 = vmatprep.subr.bf16.mxu0 %v2674_v10  ;;  %s2786_s26 = smov 64   ;;  %vm541_vm5 = vcmp.gt.s32.totalorder %v535_v57, 0  ;;  %v2684_v57 = vld [vmem:[%s3331_s10 + $0x10] ss:$8 sps:$4 sm:$0xff]   ;;  %s2342_s27 = sshll.u32 %s3351_s22, 2 }
  0x12   : > { %v551_v1 = vmul.f32 %v2893_v0, %v2893_v0  ;;  %v542_v58 = vsel %vm541_vm5, 1, %v2783_v8 }
  0x13   : > { %v546_v60 = vrot.slane %v542_v58, %v2932_v22  ;;  %v2689_v58 = vld [vmem:[%s3331_s10 + $0x24] ss:$8 sps:$4 sm:$0xff]  }
  0x14   : > { %v553_v2 = vsel %vm552_vm0, %v551_v1, 0.0  ;;  %639 = vmatpush1.bf16.msra.mxu0 %v2676_v11 }
  0x15   : > { %554 = vadd.xlane.f32.xlu0 %v553_v2  ;;  %2550 = vmatprep.subr.bf16.mxu0 %v2788_v39  ;;  %vm547_vm7 = vcmp.eq.s32.totalorder %v546_v60, 1  ;;  %v2690_v60 = vld [vmem:[%s3331_s10 + $0x30] ss:$8 sps:$4 sm:$0xff]  }
  0x16   : > { %vm548_vm8 = vmand %vm540_vm6, %vm547_vm7 }
  0x17   : > { %v2993_v62 = vsel %vm548_vm8, 0.0, %v2793_v61  ;;  %v2692_v61 = vld [vmem:[%s3331_s10 + $0x34] ss:$8 sps:$4 sm:$0xff]  }
  0xa2   : > { %v555_v12 = vpop.xlane.xlu0 %554 }
  0xa3   : > { %v557_v13 = vmul.f32 0.015625, %v555_v12 }
  0xa5   : > { %v558_v14 = vadd.f32 1e-06, %v557_v13 }
  0xa7   : > { %2741 = vrsqrt.f32 %v558_v14 }
  0xb1   : > { %v2742_v15 = vpop.eup %2741 }
  0xb2   : > { %v560_v17 = vmul.f32 %v2742_v15, %v2893_v0 }
  0xb4   : > { %v567_v18 = vmul.f32 %v2343_v16, %v560_v17 }
  0xb6   : > { %v568_v19 = vpack.c.bf16 %v567_v18, %v567_v18 }
  0xb8   : > { %2352 = vmatmul.mubr.msk.bf16.vlgmr.msra.gmra.mrb[0].mxu0 %vm552_vm0, %v568_v19 }
  0xb9   : > { %2558 = vmatprep.mubr.msk.bf16.mxu0 %vm2790_vm4, %v2788_v39 }
 0x18b   : > { %v666_v25 = vpop.f32.mrb[0].mxu0 }
 0x18c   : > { %v667_v26 = vadd.f32 %v666_v25, %v582_v24  ;;  %v668_v27 = vpop.f32.mrb[1].mxu0 }
 0x18d   : > { %v670_v28 = vpop.f32.mrb[2].mxu0  ;;  %v669_v56 = vadd.f32 %v668_v27, %v586_v54  ;;  %v2678_v27 = vld [vmem:[%s3328_s7 + $0x8] sm:$0xff]  }
 0x18e   : > { %v671_v29 = vpop.f32.mrb[3].mxu0  ;;  %695 = vrot.lane.b32.xlu1 %v667_v26, %s2784_s20  ;;  %v673_v30 = vsub.f32 0.0, %v667_v26  ;;  %v688_v49 = vmul.f32 %v667_v26, %v2943_v31  ;;  %v2679_v28 = vld [vmem:[%s3328_s7 + $0x10] sm:$0xff]  }
 0x190   : > { %692 = vrot.lane.b32.xlu0 %v673_v30, %s2785_s23 }
 0x192   : > { %702 = vrot.lane.b32.xlu1 %v2943_v31, %s2786_s26 }
 0x200   : > { %v696_v32 = vpop.permute.xlu1 %695 }
 0x202   : > { %v693_v33 = vpop.permute.xlu0 %692 }
 0x203   : > { %v698_v34 = vsel %vm682_vm1, %v693_v33, %v696_v32 }
 0x204   : > { %v699_v36 = vsel %vm684_vm2, %v698_v34, %v693_v33  ;;  %v2965_v40 = vpop.permute.xlu1 %702 }
 0x205   : > { %v700_v37 = vsel %vm686_vm3, %v699_v36, %v696_v32  ;;  %v705_v41 = vmul.f32 %v2965_v40, %v667_v26 }
 0x206   : > { %v706_v38 = vmul.f32 %v700_v37, %v2951_v35 }
 0x208   : > { %708 = vrot.lane.b32.xlu1 %v706_v38, %s2786_s26 }
 0x20c   : > { %675 = vrot.lane.b32.xlu1 %v673_v30, %s3343_s29  ;;  %v2680_v30 = vld [vmem:[%s3328_s7 + $0x18] sm:$0xff]   ;;  %s3346_s29 = smov 112  }
 0x210   : > { %679 = vrot.lane.b32.xlu1 %v667_v26, %s3342_s30  ;;  %v2677_v26 = vld [vmem:[%s3328_s7] sm:$0xff]   ;;  %s3347_s30 = smov 16  }
 0x211   : > { %2551 = vmatpush3.bf16.msra.mxu0 %v2677_v26 }
 0x212   : > { %2552 = vmatprep.subr.bf16.mxu0 %v2788_v39 }
 0x215   : > { %2553 = vmatpush3.bf16.msra.mxu0 %v2678_v27 }
 0x216   : > { %2554 = vmatprep.subr.bf16.mxu0 %v2788_v39 }
 0x219   : > { %2555 = vmatpush3.bf16.msra.mxu0 %v2679_v28 }
 0x21a   : > { %2556 = vmatprep.subr.bf16.mxu0 %v2788_v39 }
 0x21d   : > { %2557 = vmatpush3.bf16.msra.mxu0 %v2680_v30 }
 0x21e   : > { %2562 = vmatprep.subr.bf16.mxu0 %v2788_v39 }
 0x27a   : > { %v709_v42 = vpop.permute.xlu1 %708 }
 0x27b   : > { %v711_v43 = vadd.f32 %v709_v42, %v705_v41 }
 0x27d   : > { %877 = vrot.lane.b32.xlu0 %v711_v43, %s3340_s0  ;;  %713 = vrot.lane.b32.xlu1 %v711_v43, %s2786_s26 }
 0x27e   : > { %v676_v44 = vpop.permute.xlu1 %675 }
 0x282   : > { %v680_v45 = vpop.permute.xlu1 %679 }
 0x283   : > { %v683_v46 = vsel %vm682_vm1, %v676_v44, %v680_v45 }
 0x284   : > { %v685_v47 = vsel %vm684_vm2, %v683_v46, %v676_v44  ;;  %v2364_v46 = vld [vmem:[%s3329_s8] ss:$0 sm:$0xff] }
 0x285   : > { %v687_v48 = vsel %vm686_vm3, %v685_v47, %v680_v45 }
 0x286   : > { %v689_v50 = vmul.f32 %v687_v48, %v2951_v35 }
 0x288   : > { %v690_v51 = vadd.f32 %v689_v50, %v688_v49 }
 0x28a   : > { %v691_v52 = vmul.f32 0.17677669, %v690_v51 }
 0x28c   : > { %875 = vrot.lane.b32.xlu0 %v691_v52, %s3338_s17 }
 0x2ef   : > { %v714_v55 = vpop.permute.xlu1 %713  ;;  %v878_v9 = vpop.permute.xlu0 %877 }
 0x2f0   : > { %2531 = vmatpush3.xpose.msk.msra.mxu1 %vm684_vm2, %v714_v55  ;;  %v2683_v55 = vld [vmem:[%s3331_s10 + $0x4] ss:$8 sps:$4 sm:$0xff]  }
 0x2f1   : > { %2535 = vmatprep.subr.mxu1 %v2788_v39 }
 0x2f3   : > { %2533 = vmatmul.mubr.msk.f32.vlgmr.msra.gmra.mrb[0].mxu1 %vm684_vm2, %v691_v52 }
 0x2f4   : > { %2536 = vmatpush3.msra.mxu1 %v669_v56  ;;  %2537 = vmatprep.mubr.msk.f32.mxu1 %vm2790_vm4, %v2788_v39 }
 0x2f5   : > { %2540 = vmatprep.subr.mxu1 %v2788_v39 }
 0x2fe   : > { %v876_v10 = vpop.permute.xlu0 %875 }
 0x3c6   : > { %v786_v63 = vpop.f32.mrb[0].mxu1 }
 0x3c7   : > { %v787_v1 = vadd.f32 %v786_v63, %v2993_v62  ;;  %v2534_v2 = vpop.f32.mrb[1].mxu1 }
 0x3c9   : > { %v791_v3 = vsel %vm790_vm9, %v787_v1, -inf }
 0x3ca   : > { %792 = vmax.xlane.f32.xlu1 %v791_v3 }
 0x3db   : > { %964 = vrot.lane.b32.xlu1 %v669_v56, %s3338_s17  ;;  %v2681_v56 = vld [vmem:[%s3331_s10] ss:$8 sps:$4 sm:$0xff]  }
 0x457   : > { %v793_v4 = vpop.xlane.xlu1 %792 }
 0x458   : > { %v794_v5 = vsub.f32 %v787_v1, %v793_v4  ;;  %v2365_v4 = vld [vmem:[%s3330_s9] ss:$0 sm:$0xff] }
 0x45a   : > { %v795_v6 = vmul.f32 1.442695, %v794_v5 }
 0x45b   : > { %v965_v11 = vpop.permute.xlu1 %964 }
 0x45c   : > { %2743 = vpow2.f32 %v795_v6 }
 0x466   : > { %v2744_v7 = vpop.eup %2743 }
 0x467   : > { %2538 = vmatmul.mubr.msk.f32.vlgmr.msra.gmra.mrb[2].mxu1 %vm790_vm9, %v2744_v7  ;;  %v797_v25 = vsel %vm790_vm9, %v2744_v7, 0.0 }
 0x468   : > { %2541 = vmatpush3.xpose.msk.msra.mxu1 %vm684_vm2, %v878_v9  ;;  %2542 = vmatprep.mubr.msk.f32.mxu1 %vm2790_vm4, %v2788_v39  ;;  %v2693_v9 = vld [vmem:[%s3332_s11] sm:$0xff]  }
 0x469   : > { %2545 = vmatprep.subr.mxu1 %v2788_v39 }
 0x46b   : > { %2543 = vmatmul.mubr.msk.f32.vlgmr.msra.gmra.mrb[4].mxu1 %vm684_vm2, %v876_v10  ;;  %v2694_v10 = vld [vmem:[%s3332_s11 + $0x8] sm:$0xff]  }
 0x46c   : > { %2546 = vmatpush3.msra.mxu1 %v965_v11  ;;  %2547 = vmatprep.mubr.msk.f32.mxu1 %vm2790_vm4, %v2788_v39  ;;  %v2695_v11 = vld [vmem:[%s3332_s11 + $0x10] sm:$0xff]  }
 0x46d   : > { %1199 = vmatprep.subr.bf16.mxu1 %v2683_v55 }
 0x53a   : > { %v870_v12 = vpop.f32.mrb[2].mxu1 }
 0x53b   : > { %v2539_v13 = vpop.f32.mrb[3].mxu1 }
 0x53c   : > { %v2697_v13 = vld [vmem:[%s3332_s11 + $0x20] sm:$0xff]  }
 0x53e   : > { %v949_v14 = vpop.f32.mrb[4].mxu1 }
 0x53f   : > { %v950_v15 = vadd.f32 %v949_v14, %v2993_v62  ;;  %v2544_v16 = vpop.f32.mrb[5].mxu1  ;;  %v2698_v14 = vld [vmem:[%s3332_s11 + $0x28] sm:$0xff]  }
 0x540   : > { %v2700_v16 = vld [vmem:[%s3332_s11 + $0x38] sm:$0xff]  }
 0x541   : > { %v953_v17 = vsel %vm790_vm9, %v950_v15, -inf }
 0x542   : > { %954 = vmax.xlane.f32.xlu0 %v953_v17 }
 0x5cf   : > { %v955_v18 = vpop.xlane.xlu0 %954 }
 0x5d0   : > { %v956_v19 = vsub.f32 %v950_v15, %v955_v18  ;;  %v2699_v15 = vld [vmem:[%s3332_s11 + $0x30] sm:$0xff]  }
 0x5d2   : > { %v957_v20 = vmul.f32 1.442695, %v956_v19 }
 0x5d4   : > { %2745 = vpow2.f32 %v957_v20 }
 0x5de   : > { %v2746_v23 = vpop.eup %2745 }
 0x5df   : > { %2548 = vmatmul.mubr.msk.f32.vlgmr.msra.gmra.mrb[6].mxu1 %vm790_vm9, %v2746_v23  ;;  %v959_v24 = vsel %vm790_vm9, %v2746_v23, 0.0 }
 0x5e0   : > { %960 = vadd.xlane.f32.xlu0 %v959_v24  ;;  %1231 = vmatprep.mubr.bf16.mxu1 %v2783_v8 }
 0x5e1   : > { %1200 = vmatpush1.bf16.msra.mxu1 %v2681_v56  ;;  %v2386_v56 = vld [vmem:[%s3325_s4 + $0x1] ss:$0 sm:$0xff] }
 0x5e4   : > { %798 = vadd.xlane.f32.xlu0 %v797_v25 }
 0x66d   : > { %v961_v29 = vpop.xlane.xlu0 %960 }
 0x66e   : > { %2747 = vrcp.f32 %v961_v29 }
 0x671   : > { %v799_v37 = vpop.xlane.xlu0 %798 }
 0x672   : > { %2749 = vrcp.f32 %v799_v37 }
 0x678   : > { %v2748_v32 = vpop.eup %2747 }
 0x67c   : > { %v2750_v38 = vpop.eup %2749 }
 0x67d   : > { %v874_v41 = vmul.f32 %v2750_v38, %v870_v12  ;;  %v2696_v12 = vld [vmem:[%s3332_s11 + $0x18] sm:$0xff]  }
 0x6b2   : > { %v1036_v33 = vpop.f32.mrb[6].mxu1 }
 0x6b3   : > { %v1040_v34 = vmul.f32 %v2748_v32, %v1036_v33  ;;  %v2549_v36 = vpop.f32.mrb[7].mxu1  ;;  %v2384_v32 = vld [vmem:[%s3333_s12] ss:$0 sm:$0xff] }
 0x6b5   : > { %1042 = vrot.lane.b32.xlu0 %v1040_v34, %s3340_s0 }
 0x727   : > { %v1043_v42 = vpop.permute.xlu0 %1042 }
 0x728   : > { %v1045_v43 = vsel %vm684_vm2, %v874_v41, %v1043_v42 }
 0x729   : > { %v1046_v44 = vpack.c.bf16 %v1045_v43, %v1045_v43  ;;  %v2703_v43 = vld [vmem:[%s3326_s5 + $0x44] ss:$8 sps:$4 sm:$0xff]  }
 0x72b   : > { %2559 = vmatmul.mubr.msk.bf16.vlgmr.msra.gmra.mrb[4].mxu0 %vm552_vm0, %v1046_v44  ;;  %v2701_v44 = vld [vmem:[%s3326_s5 + $0x40] ss:$8 sps:$4 sm:$0xff]  }
 0x72c   : > { %2578 = vmatprep.mubr.msk.bf16.mxu0 %vm2790_vm4, %v2788_v39  ;;  %2563 = vmatpush3.bf16.msra.mxu0 %v2693_v9 }
 0x72d   : > { %2564 = vmatprep.subr.bf16.mxu0 %v2788_v39 }
 0x730   : > { %2565 = vmatpush3.bf16.msra.mxu0 %v2694_v10 }
 0x731   : > { %2566 = vmatprep.subr.bf16.mxu0 %v2788_v39 }
 0x734   : > { %2567 = vmatpush3.bf16.msra.mxu0 %v2695_v11 }
 0x735   : > { %2568 = vmatprep.subr.bf16.mxu0 %v2788_v39 }
 0x738   : > { %2569 = vmatpush3.bf16.msra.mxu0 %v2696_v12 }
 0x739   : > { %2570 = vmatprep.subr.bf16.mxu0 %v2788_v39 }
 0x73c   : > { %2571 = vmatpush3.bf16.msra.mxu0 %v2697_v13 }
 0x73d   : > { %2572 = vmatprep.subr.bf16.mxu0 %v2788_v39 }
 0x740   : > { %2573 = vmatpush3.bf16.msra.mxu0 %v2698_v14 }
 0x741   : > { %2574 = vmatprep.subr.bf16.mxu0 %v2788_v39 }
 0x744   : > { %2575 = vmatpush3.bf16.msra.mxu0 %v2699_v15 }
 0x745   : > { %2576 = vmatprep.subr.bf16.mxu0 %v2788_v39 }
 0x748   : > { %2577 = vmatpush3.bf16.msra.mxu0 %v2700_v16 }
 0x749   : > { %2602 = vmatprep.subr.bf16.mxu0 %v2788_v39 }
 0x7fe   : > { %v1116_v45 = vpop.f32.mrb[4].mxu0 }
 0x7ff   : > { %v1122_v47 = vadd.f32 %v1116_v45, %v2893_v0  ;;  %v2560_v48 = vpop.f32.mrb[5].mxu0  ;;  %v2686_v0 = vld [vmem:[%s3331_s10 + $0x14] ss:$8 sps:$4 sm:$0xff]  }
 0x800   : > { %v1119_v49 = vpop.f32.mrb[6].mxu0  ;;  %1201 = vmatprep.subr.bf16.mxu1 %v2686_v0  ;;  %v2706_v45 = vld [vmem:[%s3326_s5 + $0x54] ss:$8 sps:$4 sm:$0xff]   ;;  %v2707_v48 = vld [vmem:[%s3326_s5 + $0x60] ss:$8 sps:$4 sm:$0xff]  }
 0x801   : > { %v3037_v50 = vadd.f32 %v2364_v46, %v1122_v47  ;;  %v2561_v51 = vpop.f32.mrb[7].mxu0  ;;  %1202 = vmatpush1.bf16.msra.mxu1 %v2684_v57  ;;  %v2704_v46 = vld [vmem:[%s3326_s5 + $0x50] ss:$8 sps:$4 sm:$0xff]   ;;  %v2709_v47 = vld [vmem:[%s3326_s5 + $0x64] ss:$8 sps:$4 sm:$0xff]  }
 0x802   : > { %1203 = vmatprep.subr.bf16.mxu1 %v2689_v58  ;;  %v2710_v49 = vld [vmem:[%s3326_s5 + $0x70] ss:$8 sps:$4 sm:$0xff]  }
 0x803   : > { %v1132_v52 = vmul.f32 %v3037_v50, %v3037_v50 }
 0x805   : > { %v1133_v54 = vsel %vm552_vm0, %v1132_v52, 0.0  ;;  %1204 = vmatpush1.bf16.msra.mxu1 %v2687_v59  ;;  %v2395_v59 = vld [vmem:[%s3327_s6 + $0x2] sm:$0x3] }
 0x806   : > { %1134 = vadd.xlane.f32.xlu1 %v1133_v54  ;;  %1205 = vmatprep.subr.bf16.mxu1 %v2692_v61 }
 0x809   : > { %1206 = vmatpush1.bf16.msra.mxu1 %v2690_v60  ;;  %v1395_v60 = vrot.slane %v2395_v59, %v2932_v22 }
 0x80a   : > { %1445 = vmatprep.subr.bf16.mxu1 %v2703_v43 }
 0x893   : > { %v1135_v63 = vpop.xlane.xlu1 %1134 }
 0x894   : > { %v1136_v1 = vmul.f32 0.015625, %v1135_v63 }
 0x896   : > { %v1137_v2 = vadd.f32 1e-06, %v1136_v1 }
 0x898   : > { %2751 = vrsqrt.f32 %v1137_v2 }
 0x8a2   : > { %v2752_v3 = vpop.eup %2751 }
 0x8a3   : > { %v1139_v5 = vmul.f32 %v2752_v3, %v3037_v50 }
 0x8a5   : > { %v1146_v6 = vmul.f32 %v2365_v4, %v1139_v5 }
 0x8a7   : > { %v1147_v7 = vpack.c.bf16 %v1146_v6, %v1146_v6 }
 0x8a9   : > { %2374 = vmatmul.mubr.msk.bf16.vlgmr.msra.gmra.mrb[8].mxu1 %vm552_vm0, %v1147_v7 }
 0x8aa   : > { %1477 = vmatprep.mubr.bf16.mxu1 %v2783_v8  ;;  %1446 = vmatpush1.bf16.msra.mxu1 %v2701_v44 }
 0x8ab   : > { %1447 = vmatprep.subr.bf16.mxu1 %v2706_v45 }
 0x8ae   : > { %1448 = vmatpush1.bf16.msra.mxu1 %v2704_v46 }
 0x8af   : > { %1449 = vmatprep.subr.bf16.mxu1 %v2709_v47 }
 0x8b2   : > { %1450 = vmatpush1.bf16.msra.mxu1 %v2707_v48 }
 0x97c   : > { %v1233_v17 = vpop.f32.mrb[8].mxu1 }
 0x97d   : > { %v2375_v18 = vmul.f32 -1.442695, %v1233_v17  ;;  %v1235_v19 = vpop.f32.mrb[9].mxu1 }
 0x97e   : > { %v1237_v20 = vpop.f32.mrb[10].mxu1 }
 0x97f   : > { %2753 = vpow2.f32 %v2375_v18  ;;  %v1238_v23 = vpop.f32.mrb[11].mxu1 }
 0x989   : > { %v2754_v24 = vpop.eup %2753 }
 0x98a   : > { %v1243_v25 = vadd.f32 1.0, %v2754_v24  ;;  %v1399_v24 = vrot.slane %v2395_v59, %v585_v53 }
 0x98c   : > { %2755 = vrcp.f32 %v1243_v25 }
 0x996   : > { %v2756_v26 = vpop.eup %2755 }
 0x997   : > { %v1246_v27 = vmul.f32 %v2756_v26, %v1233_v17 }
 0x999   : > { %v1247_v28 = vmul.f32 %v1246_v27, %v1235_v19 }
 0x99b   : > { %v1248_v29 = vpack.c.bf16 %v1247_v28, %v1247_v28 }
 0x99d   : > { %2579 = vmatmul.mubr.bf16.vlgmr.msra.gmra.mrb[8].mxu0 %v1248_v29 }
 0x99e   : > { %2610 = vmatprep.mubr.msk.bf16.mxu0 %vm2790_vm4, %v2788_v39 }
 0xa70   : > { %v1347_v30 = vpop.f32.mrb[8].mxu0 }
 0xa71   : > { %v1353_v33 = vadd.f32 %v1347_v30, %v3037_v50  ;;  %v2580_v34 = vpop.f32.mrb[9].mxu0  ;;  %v2712_v50 = vld [vmem:[%s3326_s5 + $0x74] ss:$8 sps:$4 sm:$0xff]  }
 0xa72   : > { %v1350_v36 = vpop.f32.mrb[10].mxu0  ;;  %1451 = vmatprep.subr.bf16.mxu1 %v2712_v50 }
 0xa73   : > { %v3110_v37 = vadd.f32 %v2384_v32, %v1353_v33  ;;  %v2581_v38 = vpop.f32.mrb[11].mxu0  ;;  %1452 = vmatpush1.bf16.msra.mxu1 %v2710_v49 }
 0xa74   : > { %2582 = vmatprep.subr.mxu1 %v2788_v39 }
 0xa75   : > { %v1364_v41 = vmul.f32 %v3110_v37, %v3110_v37 }
 0xa77   : > { %v1365_v42 = vsel %vm552_vm0, %v1364_v41, 0.0 }
 0xa78   : > { %1366 = vadd.xlane.f32.xlu0 %v1365_v42 }
 0xb05   : > { %v1367_v51 = vpop.xlane.xlu0 %1366 }
 0xb06   : > { %v1368_v52 = vmul.f32 0.015625, %v1367_v51  ;;  %v2714_v51 = vld [vmem:[%s3328_s7 + $0x28] sm:$0xff]  }
 0xb08   : > { %v1369_v54 = vadd.f32 1e-06, %v1368_v52  ;;  %v2715_v52 = vld [vmem:[%s3328_s7 + $0x30] sm:$0xff]  }
 0xb0a   : > { %2757 = vrsqrt.f32 %v1369_v54  ;;  %v2716_v54 = vld [vmem:[%s3328_s7 + $0x38] sm:$0xff]  }
 0xb14   : > { %v2758_v55 = vpop.eup %2757 }
 0xb15   : > { %v1371_v0 = vmul.f32 %v2758_v55, %v3110_v37 }
 0xb17   : > { %v1378_v57 = vmul.f32 %v2386_v56, %v1371_v0 }
 0xb19   : > { %v1379_v58 = vpack.c.bf16 %v1378_v57, %v1378_v57 }
 0xb1b   : > { %2404 = vmatmul.mubr.msk.bf16.vlgmr.msra.gmra.mrb[12].mxu1 %vm552_vm0, %v1379_v58 }
 0xb1c   : > { %2584 = vmatprep.mubr.msk.f32.mxu1 %vm2790_vm4, %v2788_v39 }
 0xbee   : > { %v1479_v61 = vpop.f32.mrb[12].mxu1 }
 0xbef   : > { %v1480_v63 = vadd.f32 %v1479_v61, %v1395_v60  ;;  %v1481_v1 = vpop.f32.mrb[13].mxu1 }
 0xbf0   : > { %v1483_v2 = vpop.f32.mrb[14].mxu1  ;;  %v1482_v26 = vadd.f32 %v1481_v1, %v1399_v24 }
 0xbf1   : > { %v1484_v3 = vpop.f32.mrb[15].mxu1  ;;  %1505 = vrot.lane.b32.xlu0 %v1480_v63, %s2784_s20  ;;  %v1486_v4 = vsub.f32 0.0, %v1480_v63  ;;  %v1511_v11 = vmul.f32 %v1480_v63, %v2965_v40  ;;  %s3348_s20 = smov 32   ;;  %v1498_v20 = vmul.f32 %v1480_v63, %v2943_v31 }
 0xbf2   : > { %v2425_v3 = vld [vmem:[%s3329_s8 + $0x1] ss:$0 sm:$0xff] }
 0xbf3   : > { %1502 = vrot.lane.b32.xlu1 %v1486_v4, %s2785_s23  ;;  %s3349_s23 = smov 96  }
 0xc63   : > { %v1506_v5 = vpop.permute.xlu0 %1505 }
 0xc65   : > { %v1503_v6 = vpop.permute.xlu1 %1502 }
 0xc66   : > { %v1508_v7 = vsel %vm682_vm1, %v1503_v6, %v1506_v5 }
 0xc67   : > { %v1509_v9 = vsel %vm684_vm2, %v1508_v7, %v1503_v6 }
 0xc68   : > { %v1510_v10 = vsel %vm686_vm3, %v1509_v9, %v1506_v5 }
 0xc69   : > { %v1512_v22 = vmul.f32 %v1510_v10, %v2951_v35 }
 0xc6b   : > { %1514 = vrot.lane.b32.xlu1 %v1512_v22, %s2786_s26 }
 0xc6f   : > { %1488 = vrot.lane.b32.xlu1 %v1486_v4, %s3346_s29  ;;  %s530_s29 = scalar_lea.vmem %s3337_s16, %s2342_s27 }
 0xc73   : > { %1492 = vrot.lane.b32.xlu1 %v1480_v63, %s3347_s30 }
 0xcdd   : > { %v1515_v12 = vpop.permute.xlu1 %1514 }
 0xcde   : > { %v1517_v13 = vadd.f32 %v1515_v12, %v1511_v11  ;;  %v2719_v11 = vld [vmem:[%s3331_s10 + $0x44] ss:$8 sps:$4 sm:$0xff]   ;;  %v2717_v12 = vld [vmem:[%s3331_s10 + $0x40] ss:$8 sps:$4 sm:$0xff]  }
 0xce0   : > { %1682 = vrot.lane.b32.xlu0 %v1517_v13, %s3348_s20  ;;  %1519 = vrot.lane.b32.xlu1 %v1517_v13, %s2786_s26  ;;  %v2720_v13 = vld [vmem:[%s3331_s10 + $0x50] ss:$8 sps:$4 sm:$0xff]  }
 0xce1   : > { %v1489_v14 = vpop.permute.xlu1 %1488 }
 0xce5   : > { %v1493_v15 = vpop.permute.xlu1 %1492 }
 0xce6   : > { %v1495_v16 = vsel %vm682_vm1, %v1489_v14, %v1493_v15 }
 0xce7   : > { %v1496_v17 = vsel %vm684_vm2, %v1495_v16, %v1489_v14  ;;  %v2725_v14 = vld [vmem:[%s3331_s10 + $0x64] ss:$8 sps:$4 sm:$0xff]   ;;  %v2726_v16 = vld [vmem:[%s3331_s10 + $0x70] ss:$8 sps:$4 sm:$0xff]  }
 0xce8   : > { %v1497_v18 = vsel %vm686_vm3, %v1496_v17, %v1493_v15  ;;  %v2723_v15 = vld [vmem:[%s3331_s10 + $0x60] ss:$8 sps:$4 sm:$0xff]   ;;  %v2728_v17 = vld [vmem:[%s3331_s10 + $0x74] ss:$8 sps:$4 sm:$0xff]  }
 0xce9   : > { %v1499_v19 = vmul.f32 %v1497_v18, %v2951_v35 }
 0xceb   : > { %v1500_v23 = vadd.f32 %v1499_v19, %v1498_v20 }
 0xced   : > { %v1501_v40 = vmul.f32 0.17677669, %v1500_v23 }
 0xcef   : > { %1680 = vrot.lane.b32.xlu0 %v1501_v40, %s3349_s23 }
 0xd52   : > { %v1520_v25 = vpop.permute.xlu1 %1519  ;;  %v1683_v32 = vpop.permute.xlu0 %1682 }
 0xd53   : > { %2583 = vmatpush3.xpose.msk.msra.mxu1 %vm684_vm2, %v1520_v25 }
 0xd54   : > { %2587 = vmatprep.subr.mxu1 %v2788_v39 }
 0xd56   : > { %2585 = vmatmul.mubr.msk.f32.vlgmr.msra.gmra.mrb[16].mxu1 %vm684_vm2, %v1501_v40  ;;  %v2427_v40 = vld [vmem:[%s3330_s9 + $0x1] ss:$0 sm:$0xff] }
 0xd57   : > { %2588 = vmatpush3.msra.mxu1 %v1482_v26  ;;  %2589 = vmatprep.mubr.msk.f32.mxu1 %vm2790_vm4, %v2788_v39 }
 0xd58   : > { %2592 = vmatprep.subr.mxu1 %v2788_v39 }
 0xd61   : > { %v1681_v33 = vpop.permute.xlu0 %1680 }
 0xe29   : > { %v1592_v31 = vpop.f32.mrb[16].mxu1 }
 0xe2a   : > { %v1593_v35 = vadd.f32 %v1592_v31, %v2993_v62  ;;  %v2586_v27 = vpop.f32.mrb[17].mxu1  ;;  %v2729_v31 = vld [vmem:[%s3332_s11 + $0x40] sm:$0xff]  }
 0xe2b   : > { %v2731_v27 = vld [vmem:[%s3332_s11 + $0x50] sm:$0xff]  }
 0xe2c   : > { %v1596_v21 = vsel %vm790_vm9, %v1593_v35, -inf }
 0xe2d   : > { %1597 = vmax.xlane.f32.xlu1 %v1596_v21  ;;  %v2732_v21 = vld [vmem:[%s3332_s11 + $0x58] sm:$0xff]  }
 0xe3e   : > { %1769 = vrot.lane.b32.xlu1 %v1482_v26, %s3349_s23 }
 0xeba   : > { %v1598_v53 = vpop.xlane.xlu1 %1597 }
 0xebb   : > { %v1599_v28 = vsub.f32 %v1593_v35, %v1598_v53  ;;  %v2730_v35 = vld [vmem:[%s3332_s11 + $0x48] sm:$0xff]   ;;  %v2733_v53 = vld [vmem:[%s3332_s11 + $0x60] sm:$0xff]  }
 0xebd   : > { %v1600_v29 = vmul.f32 1.442695, %v1599_v28  ;;  %v2734_v28 = vld [vmem:[%s3332_s11 + $0x68] sm:$0xff]  }
 0xebe   : > { %v1770_v34 = vpop.permute.xlu1 %1769 }
 0xebf   : > { %2759 = vpow2.f32 %v1600_v29  ;;  %v2735_v29 = vld [vmem:[%s3332_s11 + $0x70] sm:$0xff]  }
 0xec9   : > { %v2760_v30 = vpop.eup %2759 }
 0xeca   : > { %2590 = vmatmul.mubr.msk.f32.vlgmr.msra.gmra.mrb[18].mxu1 %vm790_vm9, %v2760_v30  ;;  %v1602_v50 = vsel %vm790_vm9, %v2760_v30, 0.0  ;;  %v2736_v30 = vld [vmem:[%s3332_s11 + $0x78] sm:$0xff]  }
 0xecb   : > { %2593 = vmatpush3.xpose.msk.msra.mxu1 %vm684_vm2, %v1683_v32  ;;  %2594 = vmatprep.mubr.msk.f32.mxu1 %vm2790_vm4, %v2788_v39 }
 0xecc   : > { %2597 = vmatprep.subr.mxu1 %v2788_v39 }
 0xece   : > { %2595 = vmatmul.mubr.msk.f32.vlgmr.msra.gmra.mrb[20].mxu1 %vm684_vm2, %v1681_v33 }
 0xecf   : > { %2598 = vmatpush3.msra.mxu1 %v1770_v34  ;;  %2599 = vmatprep.mubr.msk.f32.mxu1 %vm2790_vm4, %v2788_v39 }
 0xed0   : > { %2008 = vmatprep.subr.bf16.mxu1 %v2719_v11 }
 0xf9d   : > { %v1675_v36 = vpop.f32.mrb[18].mxu1 }
 0xf9e   : > { %v2591_v38 = vpop.f32.mrb[19].mxu1 }
 0xfa1   : > { %v1754_v41 = vpop.f32.mrb[20].mxu1 }
 0xfa2   : > { %v1755_v42 = vadd.f32 %v1754_v41, %v2993_v62  ;;  %v2596_v43 = vpop.f32.mrb[21].mxu1  ;;  %v2713_v62 = vld [vmem:[%s3328_s7 + $0x20] sm:$0xff]  }
 0xfa3   : > { %2603 = vmatpush3.bf16.msra.mxu0 %v2713_v62 }
 0xfa4   : > { %v1758_v44 = vsel %vm790_vm9, %v1755_v42, -inf  ;;  %2604 = vmatprep.subr.bf16.mxu0 %v2788_v39 }
 0xfa5   : > { %1759 = vmax.xlane.f32.xlu0 %v1758_v44 }
 0xfa7   : > { %2605 = vmatpush3.bf16.msra.mxu0 %v2714_v51 }
 0xfa8   : > { %2606 = vmatprep.subr.bf16.mxu0 %v2788_v39 }
 0xfab   : > { %2607 = vmatpush3.bf16.msra.mxu0 %v2715_v52 }
 0xfac   : > { %2608 = vmatprep.subr.bf16.mxu0 %v2788_v39 }
 0xfaf   : > { %2609 = vmatpush3.bf16.msra.mxu0 %v2716_v54 }
 0xfb0   : > { %2614 = vmatprep.subr.bf16.mxu0 %v2788_v39 }
0x1032   : > { %v1760_v45 = vpop.xlane.xlu0 %1759 }
0x1033   : > { %v1761_v46 = vsub.f32 %v1755_v42, %v1760_v45 }
0x1035   : > { %v1762_v47 = vmul.f32 1.442695, %v1761_v46 }
0x1037   : > { %2761 = vpow2.f32 %v1762_v47 }
0x1041   : > { %v2762_v48 = vpop.eup %2761 }
0x1042   : > { %2600 = vmatmul.mubr.msk.f32.vlgmr.msra.gmra.mrb[22].mxu1 %vm790_vm9, %v2762_v48  ;;  %v1764_v49 = vsel %vm790_vm9, %v2762_v48, 0.0  ;;  %v2471_v48 = vld [vmem:[%s3333_s12 + $0x1] ss:$0 sm:$0xff] }
0x1043   : > { %1765 = vadd.xlane.f32.xlu0 %v1764_v49  ;;  %2040 = vmatprep.mubr.bf16.mxu1 %v2783_v8 }
0x1044   : > { %2009 = vmatpush1.bf16.msra.mxu1 %v2717_v12 }
0x1047   : > { %1603 = vadd.xlane.f32.xlu0 %v1602_v50 }
0x10d0   : > { %v1766_v8 = vpop.xlane.xlu0 %1765 }
0x10d1   : > { %2763 = vrcp.f32 %v1766_v8 }
0x10d4   : > { %v1604_v58 = vpop.xlane.xlu0 %1603 }
0x10d5   : > { %2765 = vrcp.f32 %v1604_v58 }
0x10db   : > { %v2764_v55 = vpop.eup %2763 }
0x10df   : > { %v2766_v59 = vpop.eup %2765 }
0x10e0   : > { %v1679_v60 = vmul.f32 %v2766_v59, %v1675_v36 }
0x1115   : > { %v1841_v56 = vpop.f32.mrb[22].mxu1 }
0x1116   : > { %v1845_v0 = vmul.f32 %v2764_v55, %v1841_v56  ;;  %v2601_v57 = vpop.f32.mrb[23].mxu1  ;;  %v2737_v55 = vld [vmem:[%s3335_s14] sm:$0xff]   ;;  %v2738_v56 = vld [vmem:[%s3335_s14 + $0x8] sm:$0xff]  }
0x1117   : > { %v2740_v57 = vld [vmem:[%s3335_s14 + $0x18] sm:$0xff]  }
0x1118   : > { %1847 = vrot.lane.b32.xlu0 %v1845_v0, %s3348_s20  ;;  %v2739_v0 = vld [vmem:[%s3335_s14 + $0x10] sm:$0xff]  }
0x118a   : > { %v1848_v61 = vpop.permute.xlu0 %1847 }
0x118b   : > { %v1850_v63 = vsel %vm684_vm2, %v1679_v60, %v1848_v61 }
0x118c   : > { %v1851_v1 = vpack.c.bf16 %v1850_v63, %v1850_v63  ;;  %v2472_v63 = vld [vmem:[%s3334_s13] ss:$0 sm:$0xff] }
0x118e   : > { %2611 = vmatmul.mubr.msk.bf16.vlgmr.msra.gmra.mrb[12].mxu0 %vm552_vm0, %v1851_v1 }
0x118f   : > { %2630 = vmatprep.mubr.msk.bf16.mxu0 %vm2790_vm4, %v2788_v39  ;;  %2615 = vmatpush3.bf16.msra.mxu0 %v2729_v31 }
0x1190   : > { %2616 = vmatprep.subr.bf16.mxu0 %v2788_v39 }
0x1193   : > { %2617 = vmatpush3.bf16.msra.mxu0 %v2730_v35 }
0x1194   : > { %2618 = vmatprep.subr.bf16.mxu0 %v2788_v39 }
0x1197   : > { %2619 = vmatpush3.bf16.msra.mxu0 %v2731_v27 }
0x1198   : > { %2620 = vmatprep.subr.bf16.mxu0 %v2788_v39 }
0x119b   : > { %2621 = vmatpush3.bf16.msra.mxu0 %v2732_v21 }
0x119c   : > { %2622 = vmatprep.subr.bf16.mxu0 %v2788_v39 }
0x119f   : > { %2623 = vmatpush3.bf16.msra.mxu0 %v2733_v53 }
0x11a0   : > { %2624 = vmatprep.subr.bf16.mxu0 %v2788_v39 }
0x11a3   : > { %2625 = vmatpush3.bf16.msra.mxu0 %v2734_v28 }
0x11a4   : > { %2626 = vmatprep.subr.bf16.mxu0 %v2788_v39 }
0x11a7   : > { %2627 = vmatpush3.bf16.msra.mxu0 %v2735_v29 }
0x11a8   : > { %2628 = vmatprep.subr.bf16.mxu0 %v2788_v39 }
0x11ab   : > { %2629 = vmatpush3.bf16.msra.mxu0 %v2736_v30 }
0x1261   : > { %v1922_v2 = vpop.f32.mrb[12].mxu0 }
0x1262   : > { %v1928_v4 = vadd.f32 %v1922_v2, %v3110_v37  ;;  %v2612_v5 = vpop.f32.mrb[13].mxu0  ;;  %v2722_v37 = vld [vmem:[%s3331_s10 + $0x54] ss:$8 sps:$4 sm:$0xff]  }
0x1263   : > { %v1925_v6 = vpop.f32.mrb[14].mxu0  ;;  %2010 = vmatprep.subr.bf16.mxu1 %v2722_v37 }
0x1264   : > { %v3219_v7 = vadd.f32 %v2425_v3, %v1928_v4  ;;  %v2613_v9 = vpop.f32.mrb[15].mxu0  ;;  %2011 = vmatpush1.bf16.msra.mxu1 %v2720_v13  ;;  %v2473_v4 = vld [vmem:[%s3336_s15] ss:$0 sm:$0xff] }
0x1265   : > { %2012 = vmatprep.subr.bf16.mxu1 %v2725_v14 }
0x1266   : > { %v1940_v10 = vmul.f32 %v3219_v7, %v3219_v7 }
0x1268   : > { %v1941_v22 = vsel %vm552_vm0, %v1940_v10, 0.0  ;;  %2013 = vmatpush1.bf16.msra.mxu1 %v2723_v15 }
0x1269   : > { %1942 = vadd.xlane.f32.xlu1 %v1941_v22  ;;  %2014 = vmatprep.subr.bf16.mxu1 %v2728_v17 }
0x126c   : > { %2015 = vmatpush1.bf16.msra.mxu1 %v2726_v16 }
0x126d   : > { %2634 = vmatprep.subr.bf16.mxu1 %v2788_v39 }
0x12f6   : > { %v1943_v18 = vpop.xlane.xlu1 %1942 }
0x12f7   : > { %v1944_v19 = vmul.f32 0.015625, %v1943_v18 }
0x12f9   : > { %v1945_v20 = vadd.f32 1e-06, %v1944_v19 }
0x12fb   : > { %2767 = vrsqrt.f32 %v1945_v20 }
0x1305   : > { %v2768_v23 = vpop.eup %2767 }
0x1306   : > { %v1947_v24 = vmul.f32 %v2768_v23, %v3219_v7 }
0x1308   : > { %v1954_v25 = vmul.f32 %v2427_v40, %v1947_v24 }
0x130a   : > { %v1955_v26 = vpack.c.bf16 %v1954_v25, %v1954_v25 }
0x130c   : > { %2444 = vmatmul.mubr.msk.bf16.vlgmr.msra.gmra.mrb[24].mxu1 %vm552_vm0, %v1955_v26 }
0x130d   : > { %2642 = vmatprep.mubr.msk.bf16.mxu1 %vm2790_vm4, %v2788_v39  ;;  %2635 = vmatpush3.bf16.msra.mxu1 %v2737_v55 }
0x130e   : > { %2636 = vmatprep.subr.bf16.mxu1 %v2788_v39 }
0x1311   : > { %2637 = vmatpush3.bf16.msra.mxu1 %v2738_v56 }
0x1312   : > { %2638 = vmatprep.subr.bf16.mxu1 %v2788_v39 }
0x1315   : > { %2639 = vmatpush3.bf16.msra.mxu1 %v2739_v0 }
0x1316   : > { %2640 = vmatprep.subr.bf16.mxu1 %v2788_v39 }
0x1319   : > { %2641 = vmatpush3.bf16.msra.mxu1 %v2740_v57 }
0x13df   : > { %v2042_v32 = vpop.f32.mrb[24].mxu1 }
0x13e0   : > { %v2445_v33 = vmul.f32 -1.442695, %v2042_v32  ;;  %v2044_v34 = vpop.f32.mrb[25].mxu1 }
0x13e1   : > { %v2046_v36 = vpop.f32.mrb[26].mxu1 }
0x13e2   : > { %2769 = vpow2.f32 %v2445_v33  ;;  %v2047_v38 = vpop.f32.mrb[27].mxu1 }
0x13ec   : > { %v2770_v41 = vpop.eup %2769 }
0x13ed   : > { %v2052_v42 = vadd.f32 1.0, %v2770_v41 }
0x13ef   : > { %2771 = vrcp.f32 %v2052_v42 }
0x13f9   : > { %v2772_v43 = vpop.eup %2771 }
0x13fa   : > { %v2055_v44 = vmul.f32 %v2772_v43, %v2042_v32 }
0x13fc   : > { %v2056_v45 = vmul.f32 %v2055_v44, %v2044_v34 }
0x13fe   : > { %v2057_v46 = vpack.c.bf16 %v2056_v45, %v2056_v45 }
0x1400   : > { %2631 = vmatmul.mubr.bf16.vlgmr.msra.gmra.mrb[16].mxu0 %v2057_v46 }
0x14d3   : > { %v2157_v47 = vpop.f32.mrb[16].mxu0 }
0x14d4   : > { %v2163_v49 = vadd.f32 %v2157_v47, %v3219_v7  ;;  %v2632_v50 = vpop.f32.mrb[17].mxu0 }
0x14d5   : > { %v2160_v62 = vpop.f32.mrb[18].mxu0 }
0x14d6   : > { %v2172_v51 = vadd.f32 %v2471_v48, %v2163_v49  ;;  %v2633_v52 = vpop.f32.mrb[19].mxu0 }
0x14d8   : > { %v2174_v8 = vmul.f32 %v2172_v51, %v2172_v51 }
0x14da   : > { %v2175_v54 = vsel %vm552_vm0, %v2174_v8, 0.0 }
0x14db   : > { %2176 = vadd.xlane.f32.xlu0 %v2175_v54 }
0x1568   : > { %v2177_v58 = vpop.xlane.xlu0 %2176 }
0x1569   : > { %v2178_v59 = vmul.f32 0.015625, %v2177_v58 }
0x156b   : > { %v2179_v60 = vadd.f32 1e-06, %v2178_v59 }
0x156d   : > { %2773 = vrsqrt.f32 %v2179_v60 }
0x1577   : > { %v2774_v61 = vpop.eup %2773 }
0x1578   : > { %v2181_v1 = vmul.f32 %v2774_v61, %v2172_v51 }
0x157a   : > { %v2188_v2 = vmul.f32 %v2472_v63, %v2181_v1 }
0x157c   : > { %v2189_v3 = vpack.c.bf16 %v2188_v2, %v2188_v2 }
0x157e   : > { %2643 = vmatmul.mubr.msk.bf16.vlgmr.msra.gmra.mrb[28].mxu1 %vm552_vm0, %v2189_v3 }
0x1651   : > { %v2266_v39 = vpop.f32.mrb[28].mxu1 }
0x1652   : > { %v2267_v5 = vadd.f32 %v2473_v4, %v2266_v39  ;;  %v2644_v6 = vpop.f32.mrb[29].mxu1 }
0x1653   : > { %v2269_v7 = vpop.f32.mrb[30].mxu1 }
0x1654   : > { %v2272_v9 = vpack.c.bf16 %v2267_v5, %v2267_v5  ;;  %v2645_v10 = vpop.f32.mrb[31].mxu1 }
0x1656   : > { %2273 = vst [vmem:[%s530_s29] sm:$0xf] %v2272_v9 }
0x1657 PF: > { %s26_s21 = sadd.s32 1, %s2781_s21  }
0x1658   : > { %p23_p4 = scmp.ge.s32.totalorder %s26_s21, 4  }
0x165a   :  { %25 = sbr.rel (!%p23_p4) target bundleno = 2 (0x2), region = 126 }

</bundles_post_ra>
